<compile_context>
chip_gen: v5e
topology: v5e:2x2
jax: 0.10.0
libtpu: 0.0.40
codegen_flags: <defaults>
</compile_context>

<pallas_src>
import jax
import jax.numpy as jnp
from jax.experimental import pallas as pl
from jax.experimental.pallas import tpu as pltpu


def _round_up(n, m):
    return ((n + m - 1) // m) * m


def _make_blstm_kernel(T, Bb, H, Op):
    """Builds the kernel with static (T, Bb, H, Op) baked in."""
    G = 8 * H          # fused gate width = one 128-lane vreg for H=16
    TB = T * Bb

    def rot2h(x):
        # Lane rotation right by 2H: out[:, j] = x[:, (j - 2H) mod 8H].
        # Written as an explicit lane concat (unambiguous; lowers to XLU rotate).
        k = 2 * H
        return jnp.concatenate([x[:, G - k:], x[:, :G - k]], axis=1)

    def kernel(xp_ref, wih0_ref, whh0_ref, b0_ref,
               w1a_ref, w1b_ref, b1_ref, whh1_ref,
               fcwa_ref, fcwb_ref, fcb_ref, out_ref):

        def fused_bilstm(xg, whh):
            # xg : (TB, 8H) input-side gate pre-activations (bias folded in),
            #      row block t = fused step t (fwd time t, bwd time T-1-t).
            # whh: (8H, 8H), nonzero rows only at [4H:6H] (where h lives).
            # Gate lane layout: i@[0:2H], f@[2H:4H], o@[4H:6H], g@[6H:8H],
            # each 2H window = [fwd | bwd].
            # State is full vreg width: c valid at [2H:4H] (f window), h valid
            # at [4H:6H] (o window); other lanes hold bounded junk that only
            # ever multiplies zero weight rows.
            h = jnp.zeros((Bb, G), jnp.float32)
            c = jnp.zeros((Bb, G), jnp.float32)
            outs = []
            for t in range(T):                    # static unroll (T small)
                g_pre = xg[t * Bb:(t + 1) * Bb, :] + jnp.dot(
                    h, whh, preferred_element_type=jnp.float32)
                s = jax.nn.sigmoid(g_pre)         # i, f, o in their windows
                tg = jnp.tanh(g_pre)              # g in [6H:8H]
                # c' = f*c (at [2H:4H]) + i*g (computed at [0:2H], rolled up)
                c = s * c + rot2h(s * rot2h(tg))
                # h' = o * tanh(c')  -> lands at [4H:6H]
                h = s * rot2h(jnp.tanh(c))
                outs.append(h)
            return outs
            # TODO(synk): if T grows beyond ~32, switch to lax.fori_loop with a
            # stacked output buffer to bound vreg live ranges.

        # ---------------- layer 0 ----------------
        xg0 = jnp.dot(xp_ref[0], wih0_ref[...],
                      preferred_element_type=jnp.float32) + b0_ref[...]   # (TB, 8H)
        h0 = fused_bilstm(xg0, whh0_ref[...])

        # -------- layer-1 input: register-resident, no VMEM scatter ------
        # hs0 row block t  holds [h_f0(t) | h_b0(T-1-t)] at lanes [4H:6H];
        # hs0r row block t holds [h_f0(T-1-t) | h_b0(t)].
        hs0 = jnp.concatenate(h0, axis=0)          # (TB, 8H)
        hs0r = jnp.concatenate(h0[::-1], axis=0)   # (TB, 8H)
        xg1 = (jnp.dot(hs0, w1a_ref[...], preferred_element_type=jnp.float32)
               + jnp.dot(hs0r, w1b_ref[...], preferred_element_type=jnp.float32)
               + b1_ref[...])                      # (TB, 8H)
        h1 = fused_bilstm(xg1, whh1_ref[...])

        # ---------------- fc head (lane-dense, 128-wide padded) ----------
        hs1 = jnp.concatenate(h1, axis=0)
        hs1r = jnp.concatenate(h1[::-1], axis=0)
        y = (jnp.dot(hs1, fcwa_ref[...], preferred_element_type=jnp.float32)
             + jnp.dot(hs1r, fcwb_ref[...], preferred_element_type=jnp.float32)
             + fcb_ref[...])                       # (TB, Op)
        out_ref[0] = y.astype(out_ref.dtype)

    return kernel


def _pack_params(params, out_pad):
    """Pack raw PyTorch-layout params into fused, padded kernel weights."""
    H = params["whh0f"].shape[1]
    G = 8 * H

    def pack_w(wf, wb):
        # wf/wb: (4H, Din) torch layout, row blocks [i, f, g, o].
        # -> block-diagonal (Din_f + Din_b, 8H) with column layout
        #    [i_f, i_b, f_f, f_b, o_f, o_b, g_f, g_b].
        wf_t = wf.T.astype(jnp.float32)
        wb_t = wb.T.astype(jnp.float32)
        zf = jnp.zeros((wf_t.shape[0], H), jnp.float32)
        zb = jnp.zeros((wb_t.shape[0], H), jnp.float32)
        cols = []
        for gi in (0, 1, 3, 2):                    # gate column order i, f, o, g
            s = gi * H
            cols.append(jnp.concatenate([wf_t[:, s:s + H], zb], axis=0))  # *_f
            cols.append(jnp.concatenate([zf, wb_t[:, s:s + H]], axis=0))  # *_b
        return jnp.concatenate(cols, axis=1)

    def pack_b(bf, bb):
        parts = []
        for gi in (0, 1, 3, 2):
            parts.append(bf[gi * H:(gi + 1) * H])
            parts.append(bb[gi * H:(gi + 1) * H])
        return jnp.concatenate(parts).reshape(1, G).astype(jnp.float32)

    def place_rows(src, row_map, ncols):
        # Scatter row blocks of `src` into a zero (8H, ncols) matrix so the
        # kernel can consume full-width (B, 8H) hidden states directly.
        out = jnp.zeros((G, ncols), jnp.float32)
        for dst, s0, s1 in row_map:
            out = out.at[dst:dst + (s1 - s0), :].set(src[s0:s1])
        return out

    wih1 = pack_w(params["wih1f"], params["wih1b"])          # (4H, 8H)
    fcw_t = params["fcw"].T.astype(jnp.float32)              # (2H, O)
    O = fcw_t.shape[1]
    fcw_pad = jnp.zeros((2 * H, out_pad), jnp.float32).at[:, :O].set(fcw_t)

    return dict(
        wih0=pack_w(params["wih0f"], params["wih0b"]),                     # (2*IN, 8H)
        whh0=place_rows(pack_w(params["whh0f"], params["whh0b"]),
                        [(4 * H, 0, 2 * H)], G),                           # (8H, 8H)
        b0=pack_b(params["b0f"], params["b0b"]),                           # (1, 8H)
        # layer-1 input weights applied to hs0 (A) and hs0r (B); rows placed at
        # the lane windows where h_f / h_b live ([4H:5H] / [5H:6H]).
        w1a=place_rows(wih1, [(4 * H, 0, H), (5 * H, 3 * H, 4 * H)], G),   # (8H, 8H)
        w1b=place_rows(wih1, [(4 * H, 2 * H, 3 * H), (5 * H, H, 2 * H)], G),
        b1=pack_b(params["b1f"], params["b1b"]),
        whh1=place_rows(pack_w(params["whh1f"], params["whh1b"]),
                        [(4 * H, 0, 2 * H)], G),
        fcwa=place_rows(fcw_pad, [(4 * H, 0, H)], out_pad),                # (8H, Op)
        fcwb=place_rows(fcw_pad, [(5 * H, H, 2 * H)], out_pad),
        fcb=jnp.zeros((1, out_pad), jnp.float32).at[0, :O].set(
            params["fcb"].astype(jnp.float32)),
    )


def blstm_forward(x, params):
    """x: (B, T, IN) float32, batch_first like the PyTorch module."""
    B, T, IN = x.shape
    H = params["whh0f"].shape[1]
    O = params["fcw"].shape[0]
    G = 8 * H
    Op = 128                                   # lane-dense padded fc output width

    # Pad batch to >= 8 sublanes; block it over a parallel grid axis.
    Bb = min(_round_up(max(B, 1), 8), 64)
    Bp = _round_up(B, Bb)
    nb = Bp // Bb
    TB = T * Bb

    p = _pack_params(params, Op)

    xf = x.astype(jnp.float32)
    if Bp != B:
        xf = jnp.concatenate([xf, jnp.zeros((Bp - B, T, IN), jnp.float32)], axis=0)
    # Pair each fused step's fwd/bwd inputs: row block t = [x(t) | x(T-1-t)].
    x_t = jnp.transpose(xf, (1, 0, 2))                        # (T, Bp, IN)
    x_pair = jnp.concatenate([x_t, x_t[::-1]], axis=-1)       # (T, Bp, 2*IN)
    x_pair = (x_pair.reshape(T, nb, Bb, 2 * IN)
              .transpose(1, 0, 2, 3)
              .reshape(nb, TB, 2 * IN))                       # rows t-major per block

    inputs = [x_pair, p["wih0"], p["whh0"], p["b0"],
              p["w1a"], p["w1b"], p["b1"], p["whh1"],
              p["fcwa"], p["fcwb"], p["fcb"]]
    in_specs = [pl.BlockSpec((1, TB, 2 * IN), lambda j: (j, 0, 0))]
    in_specs += [pl.BlockSpec(w.shape, lambda j: (0, 0)) for w in inputs[1:]]

    flops = nb * (2 * TB * (2 * IN) * G            # layer-0 input matmul
                  + 2 * (2 * TB * G * G)           # layer-1 input matmuls
                  + 2 * T * (2 * Bb * G * G)       # recurrent matmuls (2 layers)
                  + 2 * (2 * TB * G * Op))         # fc matmuls
    transcendentals = nb * 2 * T * Bb * 3 * G
    bytes_accessed = 4 * (int(x_pair.size)
                          + nb * sum(int(w.size) for w in inputs[1:])
                          + nb * TB * Op)

    out = pl.pallas_call(
        _make_blstm_kernel(T, Bb, H, Op),
        out_shape=jax.ShapeDtypeStruct((nb, TB, Op), jnp.float32),
        grid=(nb,),
        in_specs=in_specs,
        out_specs=pl.BlockSpec((1, TB, Op), lambda j: (j, 0, 0)),
        compiler_params=pltpu.CompilerParams(
            dimension_semantics=("parallel",)),
        cost_estimate=pl.CostEstimate(flops=int(flops),
                                      transcendentals=int(transcendentals),
                                      bytes_accessed=int(bytes_accessed)),
    )(*inputs)

    out = (out.reshape(nb, T, Bb, Op)
           .transpose(0, 2, 1, 3)
           .reshape(Bp, T, Op))[:B, :, :O]           # (B, T, O), batch_first
    return out


def init_params(seed=0, in_size=3, out_size=3, hidden=16):
    """Deterministic params matching nn.LSTM(3,16,2,bidirectional=True)+Linear(32,3),
    stored in raw PyTorch layout (kernel packing happens in the wrapper)."""
    H = hidden
    key = jax.random.PRNGKey(seed)

    def nxt():
        nonlocal key
        key, sub = jax.random.split(key)
        return sub

    def uni(shape, k):
        return jax.random.uniform(nxt(), shape, jnp.float32, -k, k)

    params = {}
    k = float(H) ** -0.5

    def lstm_cell(tag, din):
        params[f"wih{tag}"] = uni((4 * H, din), k)
        params[f"whh{tag}"] = uni((4 * H, H), k)
        b_ih = uni((4 * H,), k)
        b_hh = uni((4 * H,), k)
        params[f"b{tag}"] = b_ih + b_hh              # combined bias, (4H,)

    lstm_cell("0f", in_size)
    lstm_cell("0b", in_size)
    lstm_cell("1f", 2 * H)
    lstm_cell("1b", 2 * H)

    kf = float(2 * H) ** -0.5
    params["fcw"] = uni((out_size, 2 * H), kf)
    params["fcb"] = uni((out_size,), kf)
    return params


def reference_forward(x, params):
    """Pure-JAX reference with PyTorch LSTM math (for correctness check)."""
    xt = jnp.transpose(x, (1, 0, 2)).astype(jnp.float32)
    H = params["whh0f"].shape[1]

    def cell(xs, w_ih, w_hh, b, reverse):
        T, B, _ = xs.shape
        h = jnp.zeros((B, H), jnp.float32)
        c = jnp.zeros((B, H), jnp.float32)
        outs = [None] * T
        order = range(T - 1, -1, -1) if reverse else range(T)
        for t in order:
            gates = xs[t] @ w_ih.T + h @ w_hh.T + b
            i = jax.nn.sigmoid(gates[:, :H])
            f = jax.nn.sigmoid(gates[:, H:2 * H])
            g = jnp.tanh(gates[:, 2 * H:3 * H])
            o = jax.nn.sigmoid(gates[:, 3 * H:])
            c = f * c + i * g
            h = o * jnp.tanh(c)
            outs[t] = h
        return jnp.stack(outs, 0)

    l0 = jnp.concatenate(
        [cell(xt, params["wih0f"], params["whh0f"], params["b0f"], False),
         cell(xt, params["wih0b"], params["whh0b"], params["b0b"], True)], -1)
    l1 = jnp.concatenate(
        [cell(l0, params["wih1f"], params["whh1f"], params["b1f"], False),
         cell(l0, params["wih1b"], params["whh1b"], params["b1b"], True)], -1)
    y = l1 @ params["fcw"].T + params["fcb"]
    return jnp.transpose(y, (1, 0, 2))


if __name__ == "__main__":
    B, T, IN, H, O = 2, 8, 3, 16, 3
    params = init_params(seed=0, in_size=IN, out_size=O, hidden=H)
    x = jax.random.normal(jax.random.PRNGKey(0), (B, T, IN), jnp.float32)

    out = jax.block_until_ready(blstm_forward(x, params))
    assert out.shape == (B, T, O), out.shape

    ref = reference_forward(x, params)
    if not jnp.allclose(out, ref, atol=2e-4, rtol=2e-4):
        max_err = float(jnp.max(jnp.abs(out - ref)))
        raise AssertionError(f"Pallas BLSTM mismatch vs reference (max|err|={max_err})")
    print("KERNEL_OK")
</pallas_src>

<mosaic_0001>
module attributes {stable_mosaic.version = 11 : i64} {
  func.func @kernel(%arg0: i32, %arg1: memref<1x64x6xf32, #tpu.memory_space<vmem>>, %arg2: memref<6x128xf32, #tpu.memory_space<vmem>>, %arg3: memref<128x128xf32, #tpu.memory_space<vmem>>, %arg4: memref<1x128xf32, #tpu.memory_space<vmem>>, %arg5: memref<128x128xf32, #tpu.memory_space<vmem>>, %arg6: memref<128x128xf32, #tpu.memory_space<vmem>>, %arg7: memref<1x128xf32, #tpu.memory_space<vmem>>, %arg8: memref<128x128xf32, #tpu.memory_space<vmem>>, %arg9: memref<128x128xf32, #tpu.memory_space<vmem>>, %arg10: memref<128x128xf32, #tpu.memory_space<vmem>>, %arg11: memref<1x128xf32, #tpu.memory_space<vmem>>, %arg12: memref<1x64x128xf32, #tpu.memory_space<vmem>>) attributes {dimension_semantics = [#tpu.dimension_semantics<parallel>], iteration_bounds = array<i64: 1>, scalar_prefetch = 0 : i64, scratch_operands = 0 : i64, tpu.core_type = #tpu.core_type<tc>, window_params = [{transform_indices = @transform_0, window_bounds = array<i64: 1, 64, 6>}, {pipeline_mode = #tpu.pipeline_mode<synchronous>, transform_indices = @transform_1, window_bounds = array<i64: 6, 128>}, {pipeline_mode = #tpu.pipeline_mode<synchronous>, transform_indices = @transform_2, window_bounds = array<i64: 128, 128>}, {pipeline_mode = #tpu.pipeline_mode<synchronous>, transform_indices = @transform_3, window_bounds = array<i64: 1, 128>}, {pipeline_mode = #tpu.pipeline_mode<synchronous>, transform_indices = @transform_4, window_bounds = array<i64: 128, 128>}, {pipeline_mode = #tpu.pipeline_mode<synchronous>, transform_indices = @transform_5, window_bounds = array<i64: 128, 128>}, {pipeline_mode = #tpu.pipeline_mode<synchronous>, transform_indices = @transform_6, window_bounds = array<i64: 1, 128>}, {pipeline_mode = #tpu.pipeline_mode<synchronous>, transform_indices = @transform_7, window_bounds = array<i64: 128, 128>}, {pipeline_mode = #tpu.pipeline_mode<synchronous>, transform_indices = @transform_8, window_bounds = array<i64: 128, 128>}, {pipeline_mode = #tpu.pipeline_mode<synchronous>, transform_indices = @transform_9, window_bounds = array<i64: 128, 128>}, {pipeline_mode = #tpu.pipeline_mode<synchronous>, transform_indices = @transform_10, window_bounds = array<i64: 1, 128>}, {transform_indices = @transform_11, window_bounds = array<i64: 1, 64, 128>}]} {
    %c0 = arith.constant 0 : index
    %c0_0 = arith.constant 0 : index
    %c0_1 = arith.constant 0 : index
    %0 = vector.load %arg1[%c0, %c0_0, %c0_1] : memref<1x64x6xf32, #tpu.memory_space<vmem>>, vector<1x64x6xf32>
    %1 = vector.shape_cast %0 : vector<1x64x6xf32> to vector<64x6xf32>
    %c0_2 = arith.constant 0 : index
    %c0_3 = arith.constant 0 : index
    %2 = vector.load %arg2[%c0_2, %c0_3] : memref<6x128xf32, #tpu.memory_space<vmem>>, vector<6x128xf32>
    %cst = arith.constant dense<0.000000e+00> : vector<64x128xf32>
    %3 = tpu.matmul %1, %2, %cst {dimension_numbers = #tpu.dot_dimension_numbers<[1], [0], [0], [1], [0, 0, 1, 1], [], []>} : vector<64x6xf32>, vector<6x128xf32>, vector<64x128xf32> -> vector<64x128xf32>
    %c0_4 = arith.constant 0 : index
    %c0_5 = arith.constant 0 : index
    %4 = vector.load %arg4[%c0_4, %c0_5] : memref<1x128xf32, #tpu.memory_space<vmem>>, vector<1x128xf32>
    %5 = vector.broadcast %4 : vector<1x128xf32> to vector<64x128xf32>
    %6 = arith.addf %3, %5 : vector<64x128xf32>
    %c0_6 = arith.constant 0 : index
    %c0_7 = arith.constant 0 : index
    %7 = vector.load %arg3[%c0_6, %c0_7] : memref<128x128xf32, #tpu.memory_space<vmem>>, vector<128x128xf32>
    %cst_8 = arith.constant 0.000000e+00 : f32
    %8 = vector.broadcast %cst_8 : f32 to vector<8x128xf32>
    %cst_9 = arith.constant 0.000000e+00 : f32
    %9 = vector.broadcast %cst_9 : f32 to vector<8x128xf32>
    %10 = vector.extract_strided_slice %6 {offsets = [0, 0], sizes = [8, 128], strides = [1, 1]} : vector<64x128xf32> to vector<8x128xf32>
    %cst_10 = arith.constant dense<0.000000e+00> : vector<8x128xf32>
    %11 = tpu.matmul %8, %7, %cst_10 {dimension_numbers = #tpu.dot_dimension_numbers<[1], [0], [0], [1], [0, 0, 1, 1], [], []>} : vector<8x128xf32>, vector<128x128xf32>, vector<8x128xf32> -> vector<8x128xf32>
    %12 = arith.addf %10, %11 : vector<8x128xf32>
    %13 = arith.negf %12 : vector<8x128xf32>
    %14 = math.exp %13 : vector<8x128xf32>
    %cst_11 = arith.constant 1.000000e+00 : f32
    %15 = vector.broadcast %cst_11 : f32 to vector<8x128xf32>
    %16 = arith.addf %15, %14 : vector<8x128xf32>
    %17 = arith.divf %15, %16 : vector<8x128xf32>
    %18 = math.tanh %12 : vector<8x128xf32>
    %19 = arith.mulf %17, %9 : vector<8x128xf32>
    %20 = vector.extract_strided_slice %18 {offsets = [0, 96], sizes = [8, 32], strides = [1, 1]} : vector<8x128xf32> to vector<8x32xf32>
    %21 = vector.extract_strided_slice %18 {offsets = [0, 0], sizes = [8, 96], strides = [1, 1]} : vector<8x128xf32> to vector<8x96xf32>
    %22 = tpu.concatenate %20, %21 in 1 : vector<8x32xf32>, vector<8x96xf32> -> vector<8x128xf32>
    %23 = arith.mulf %17, %22 : vector<8x128xf32>
    %24 = vector.extract_strided_slice %23 {offsets = [0, 96], sizes = [8, 32], strides = [1, 1]} : vector<8x128xf32> to vector<8x32xf32>
    %25 = vector.extract_strided_slice %23 {offsets = [0, 0], sizes = [8, 96], strides = [1, 1]} : vector<8x128xf32> to vector<8x96xf32>
    %26 = tpu.concatenate %24, %25 in 1 : vector<8x32xf32>, vector<8x96xf32> -> vector<8x128xf32>
    %27 = arith.addf %19, %26 : vector<8x128xf32>
    %28 = math.tanh %27 : vector<8x128xf32>
    %29 = vector.extract_strided_slice %28 {offsets = [0, 96], sizes = [8, 32], strides = [1, 1]} : vector<8x128xf32> to vector<8x32xf32>
    %30 = vector.extract_strided_slice %28 {offsets = [0, 0], sizes = [8, 96], strides = [1, 1]} : vector<8x128xf32> to vector<8x96xf32>
    %31 = tpu.concatenate %29, %30 in 1 : vector<8x32xf32>, vector<8x96xf32> -> vector<8x128xf32>
    %32 = arith.mulf %17, %31 : vector<8x128xf32>
    %33 = vector.extract_strided_slice %6 {offsets = [8, 0], sizes = [8, 128], strides = [1, 1]} : vector<64x128xf32> to vector<8x128xf32>
    %cst_12 = arith.constant dense<0.000000e+00> : vector<8x128xf32>
    %34 = tpu.matmul %32, %7, %cst_12 {dimension_numbers = #tpu.dot_dimension_numbers<[1], [0], [0], [1], [0, 0, 1, 1], [], []>} : vector<8x128xf32>, vector<128x128xf32>, vector<8x128xf32> -> vector<8x128xf32>
    %35 = arith.addf %33, %34 : vector<8x128xf32>
    %36 = arith.negf %35 : vector<8x128xf32>
    %37 = math.exp %36 : vector<8x128xf32>
    %cst_13 = arith.constant 1.000000e+00 : f32
    %38 = vector.broadcast %cst_13 : f32 to vector<8x128xf32>
    %39 = arith.addf %38, %37 : vector<8x128xf32>
    %40 = arith.divf %38, %39 : vector<8x128xf32>
    %41 = math.tanh %35 : vector<8x128xf32>
    %42 = arith.mulf %40, %27 : vector<8x128xf32>
    %43 = vector.extract_strided_slice %41 {offsets = [0, 96], sizes = [8, 32], strides = [1, 1]} : vector<8x128xf32> to vector<8x32xf32>
    %44 = vector.extract_strided_slice %41 {offsets = [0, 0], sizes = [8, 96], strides = [1, 1]} : vector<8x128xf32> to vector<8x96xf32>
    %45 = tpu.concatenate %43, %44 in 1 : vector<8x32xf32>, vector<8x96xf32> -> vector<8x128xf32>
    %46 = arith.mulf %40, %45 : vector<8x128xf32>
    %47 = vector.extract_strided_slice %46 {offsets = [0, 96], sizes = [8, 32], strides = [1, 1]} : vector<8x128xf32> to vector<8x32xf32>
    %48 = vector.extract_strided_slice %46 {offsets = [0, 0], sizes = [8, 96], strides = [1, 1]} : vector<8x128xf32> to vector<8x96xf32>
    %49 = tpu.concatenate %47, %48 in 1 : vector<8x32xf32>, vector<8x96xf32> -> vector<8x128xf32>
    %50 = arith.addf %42, %49 : vector<8x128xf32>
    %51 = math.tanh %50 : vector<8x128xf32>
    %52 = vector.extract_strided_slice %51 {offsets = [0, 96], sizes = [8, 32], strides = [1, 1]} : vector<8x128xf32> to vector<8x32xf32>
    %53 = vector.extract_strided_slice %51 {offsets = [0, 0], sizes = [8, 96], strides = [1, 1]} : vector<8x128xf32> to vector<8x96xf32>
    %54 = tpu.concatenate %52, %53 in 1 : vector<8x32xf32>, vector<8x96xf32> -> vector<8x128xf32>
    %55 = arith.mulf %40, %54 : vector<8x128xf32>
    %56 = vector.extract_strided_slice %6 {offsets = [16, 0], sizes = [8, 128], strides = [1, 1]} : vector<64x128xf32> to vector<8x128xf32>
    %cst_14 = arith.constant dense<0.000000e+00> : vector<8x128xf32>
    %57 = tpu.matmul %55, %7, %cst_14 {dimension_numbers = #tpu.dot_dimension_numbers<[1], [0], [0], [1], [0, 0, 1, 1], [], []>} : vector<8x128xf32>, vector<128x128xf32>, vector<8x128xf32> -> vector<8x128xf32>
    %58 = arith.addf %56, %57 : vector<8x128xf32>
    %59 = arith.negf %58 : vector<8x128xf32>
    %60 = math.exp %59 : vector<8x128xf32>
    %cst_15 = arith.constant 1.000000e+00 : f32
    %61 = vector.broadcast %cst_15 : f32 to vector<8x128xf32>
    %62 = arith.addf %61, %60 : vector<8x128xf32>
    %63 = arith.divf %61, %62 : vector<8x128xf32>
    %64 = math.tanh %58 : vector<8x128xf32>
    %65 = arith.mulf %63, %50 : vector<8x128xf32>
    %66 = vector.extract_strided_slice %64 {offsets = [0, 96], sizes = [8, 32], strides = [1, 1]} : vector<8x128xf32> to vector<8x32xf32>
    %67 = vector.extract_strided_slice %64 {offsets = [0, 0], sizes = [8, 96], strides = [1, 1]} : vector<8x128xf32> to vector<8x96xf32>
    %68 = tpu.concatenate %66, %67 in 1 : vector<8x32xf32>, vector<8x96xf32> -> vector<8x128xf32>
    %69 = arith.mulf %63, %68 : vector<8x128xf32>
    %70 = vector.extract_strided_slice %69 {offsets = [0, 96], sizes = [8, 32], strides = [1, 1]} : vector<8x128xf32> to vector<8x32xf32>
    %71 = vector.extract_strided_slice %69 {offsets = [0, 0], sizes = [8, 96], strides = [1, 1]} : vector<8x128xf32> to vector<8x96xf32>
    %72 = tpu.concatenate %70, %71 in 1 : vector<8x32xf32>, vector<8x96xf32> -> vector<8x128xf32>
    %73 = arith.addf %65, %72 : vector<8x128xf32>
    %74 = math.tanh %73 : vector<8x128xf32>
    %75 = vector.extract_strided_slice %74 {offsets = [0, 96], sizes = [8, 32], strides = [1, 1]} : vector<8x128xf32> to vector<8x32xf32>
    %76 = vector.extract_strided_slice %74 {offsets = [0, 0], sizes = [8, 96], strides = [1, 1]} : vector<8x128xf32> to vector<8x96xf32>
    %77 = tpu.concatenate %75, %76 in 1 : vector<8x32xf32>, vector<8x96xf32> -> vector<8x128xf32>
    %78 = arith.mulf %63, %77 : vector<8x128xf32>
    %79 = vector.extract_strided_slice %6 {offsets = [24, 0], sizes = [8, 128], strides = [1, 1]} : vector<64x128xf32> to vector<8x128xf32>
    %cst_16 = arith.constant dense<0.000000e+00> : vector<8x128xf32>
    %80 = tpu.matmul %78, %7, %cst_16 {dimension_numbers = #tpu.dot_dimension_numbers<[1], [0], [0], [1], [0, 0, 1, 1], [], []>} : vector<8x128xf32>, vector<128x128xf32>, vector<8x128xf32> -> vector<8x128xf32>
    %81 = arith.addf %79, %80 : vector<8x128xf32>
    %82 = arith.negf %81 : vector<8x128xf32>
    %83 = math.exp %82 : vector<8x128xf32>
    %cst_17 = arith.constant 1.000000e+00 : f32
    %84 = vector.broadcast %cst_17 : f32 to vector<8x128xf32>
    %85 = arith.addf %84, %83 : vector<8x128xf32>
    %86 = arith.divf %84, %85 : vector<8x128xf32>
    %87 = math.tanh %81 : vector<8x128xf32>
    %88 = arith.mulf %86, %73 : vector<8x128xf32>
    %89 = vector.extract_strided_slice %87 {offsets = [0, 96], sizes = [8, 32], strides = [1, 1]} : vector<8x128xf32> to vector<8x32xf32>
    %90 = vector.extract_strided_slice %87 {offsets = [0, 0], sizes = [8, 96], strides = [1, 1]} : vector<8x128xf32> to vector<8x96xf32>
    %91 = tpu.concatenate %89, %90 in 1 : vector<8x32xf32>, vector<8x96xf32> -> vector<8x128xf32>
    %92 = arith.mulf %86, %91 : vector<8x128xf32>
    %93 = vector.extract_strided_slice %92 {offsets = [0, 96], sizes = [8, 32], strides = [1, 1]} : vector<8x128xf32> to vector<8x32xf32>
    %94 = vector.extract_strided_slice %92 {offsets = [0, 0], sizes = [8, 96], strides = [1, 1]} : vector<8x128xf32> to vector<8x96xf32>
    %95 = tpu.concatenate %93, %94 in 1 : vector<8x32xf32>, vector<8x96xf32> -> vector<8x128xf32>
    %96 = arith.addf %88, %95 : vector<8x128xf32>
    %97 = math.tanh %96 : vector<8x128xf32>
    %98 = vector.extract_strided_slice %97 {offsets = [0, 96], sizes = [8, 32], strides = [1, 1]} : vector<8x128xf32> to vector<8x32xf32>
    %99 = vector.extract_strided_slice %97 {offsets = [0, 0], sizes = [8, 96], strides = [1, 1]} : vector<8x128xf32> to vector<8x96xf32>
    %100 = tpu.concatenate %98, %99 in 1 : vector<8x32xf32>, vector<8x96xf32> -> vector<8x128xf32>
    %101 = arith.mulf %86, %100 : vector<8x128xf32>
    %102 = vector.extract_strided_slice %6 {offsets = [32, 0], sizes = [8, 128], strides = [1, 1]} : vector<64x128xf32> to vector<8x128xf32>
    %cst_18 = arith.constant dense<0.000000e+00> : vector<8x128xf32>
    %103 = tpu.matmul %101, %7, %cst_18 {dimension_numbers = #tpu.dot_dimension_numbers<[1], [0], [0], [1], [0, 0, 1, 1], [], []>} : vector<8x128xf32>, vector<128x128xf32>, vector<8x128xf32> -> vector<8x128xf32>
    %104 = arith.addf %102, %103 : vector<8x128xf32>
    %105 = arith.negf %104 : vector<8x128xf32>
    %106 = math.exp %105 : vector<8x128xf32>
    %cst_19 = arith.constant 1.000000e+00 : f32
    %107 = vector.broadcast %cst_19 : f32 to vector<8x128xf32>
    %108 = arith.addf %107, %106 : vector<8x128xf32>
    %109 = arith.divf %107, %108 : vector<8x128xf32>
    %110 = math.tanh %104 : vector<8x128xf32>
    %111 = arith.mulf %109, %96 : vector<8x128xf32>
    %112 = vector.extract_strided_slice %110 {offsets = [0, 96], sizes = [8, 32], strides = [1, 1]} : vector<8x128xf32> to vector<8x32xf32>
    %113 = vector.extract_strided_slice %110 {offsets = [0, 0], sizes = [8, 96], strides = [1, 1]} : vector<8x128xf32> to vector<8x96xf32>
    %114 = tpu.concatenate %112, %113 in 1 : vector<8x32xf32>, vector<8x96xf32> -> vector<8x128xf32>
    %115 = arith.mulf %109, %114 : vector<8x128xf32>
    %116 = vector.extract_strided_slice %115 {offsets = [0, 96], sizes = [8, 32], strides = [1, 1]} : vector<8x128xf32> to vector<8x32xf32>
    %117 = vector.extract_strided_slice %115 {offsets = [0, 0], sizes = [8, 96], strides = [1, 1]} : vector<8x128xf32> to vector<8x96xf32>
    %118 = tpu.concatenate %116, %117 in 1 : vector<8x32xf32>, vector<8x96xf32> -> vector<8x128xf32>
    %119 = arith.addf %111, %118 : vector<8x128xf32>
    %120 = math.tanh %119 : vector<8x128xf32>
    %121 = vector.extract_strided_slice %120 {offsets = [0, 96], sizes = [8, 32], strides = [1, 1]} : vector<8x128xf32> to vector<8x32xf32>
    %122 = vector.extract_strided_slice %120 {offsets = [0, 0], sizes = [8, 96], strides = [1, 1]} : vector<8x128xf32> to vector<8x96xf32>
    %123 = tpu.concatenate %121, %122 in 1 : vector<8x32xf32>, vector<8x96xf32> -> vector<8x128xf32>
    %124 = arith.mulf %109, %123 : vector<8x128xf32>
    %125 = vector.extract_strided_slice %6 {offsets = [40, 0], sizes = [8, 128], strides = [1, 1]} : vector<64x128xf32> to vector<8x128xf32>
    %cst_20 = arith.constant dense<0.000000e+00> : vector<8x128xf32>
    %126 = tpu.matmul %124, %7, %cst_20 {dimension_numbers = #tpu.dot_dimension_numbers<[1], [0], [0], [1], [0, 0, 1, 1], [], []>} : vector<8x128xf32>, vector<128x128xf32>, vector<8x128xf32> -> vector<8x128xf32>
    %127 = arith.addf %125, %126 : vector<8x128xf32>
    %128 = arith.negf %127 : vector<8x128xf32>
    %129 = math.exp %128 : vector<8x128xf32>
    %cst_21 = arith.constant 1.000000e+00 : f32
    %130 = vector.broadcast %cst_21 : f32 to vector<8x128xf32>
    %131 = arith.addf %130, %129 : vector<8x128xf32>
    %132 = arith.divf %130, %131 : vector<8x128xf32>
    %133 = math.tanh %127 : vector<8x128xf32>
    %134 = arith.mulf %132, %119 : vector<8x128xf32>
    %135 = vector.extract_strided_slice %133 {offsets = [0, 96], sizes = [8, 32], strides = [1, 1]} : vector<8x128xf32> to vector<8x32xf32>
    %136 = vector.extract_strided_slice %133 {offsets = [0, 0], sizes = [8, 96], strides = [1, 1]} : vector<8x128xf32> to vector<8x96xf32>
    %137 = tpu.concatenate %135, %136 in 1 : vector<8x32xf32>, vector<8x96xf32> -> vector<8x128xf32>
    %138 = arith.mulf %132, %137 : vector<8x128xf32>
    %139 = vector.extract_strided_slice %138 {offsets = [0, 96], sizes = [8, 32], strides = [1, 1]} : vector<8x128xf32> to vector<8x32xf32>
    %140 = vector.extract_strided_slice %138 {offsets = [0, 0], sizes = [8, 96], strides = [1, 1]} : vector<8x128xf32> to vector<8x96xf32>
    %141 = tpu.concatenate %139, %140 in 1 : vector<8x32xf32>, vector<8x96xf32> -> vector<8x128xf32>
    %142 = arith.addf %134, %141 : vector<8x128xf32>
    %143 = math.tanh %142 : vector<8x128xf32>
    %144 = vector.extract_strided_slice %143 {offsets = [0, 96], sizes = [8, 32], strides = [1, 1]} : vector<8x128xf32> to vector<8x32xf32>
    %145 = vector.extract_strided_slice %143 {offsets = [0, 0], sizes = [8, 96], strides = [1, 1]} : vector<8x128xf32> to vector<8x96xf32>
    %146 = tpu.concatenate %144, %145 in 1 : vector<8x32xf32>, vector<8x96xf32> -> vector<8x128xf32>
    %147 = arith.mulf %132, %146 : vector<8x128xf32>
    %148 = vector.extract_strided_slice %6 {offsets = [48, 0], sizes = [8, 128], strides = [1, 1]} : vector<64x128xf32> to vector<8x128xf32>
    %cst_22 = arith.constant dense<0.000000e+00> : vector<8x128xf32>
    %149 = tpu.matmul %147, %7, %cst_22 {dimension_numbers = #tpu.dot_dimension_numbers<[1], [0], [0], [1], [0, 0, 1, 1], [], []>} : vector<8x128xf32>, vector<128x128xf32>, vector<8x128xf32> -> vector<8x128xf32>
    %150 = arith.addf %148, %149 : vector<8x128xf32>
    %151 = arith.negf %150 : vector<8x128xf32>
    %152 = math.exp %151 : vector<8x128xf32>
    %cst_23 = arith.constant 1.000000e+00 : f32
    %153 = vector.broadcast %cst_23 : f32 to vector<8x128xf32>
    %154 = arith.addf %153, %152 : vector<8x128xf32>
    %155 = arith.divf %153, %154 : vector<8x128xf32>
    %156 = math.tanh %150 : vector<8x128xf32>
    %157 = arith.mulf %155, %142 : vector<8x128xf32>
    %158 = vector.extract_strided_slice %156 {offsets = [0, 96], sizes = [8, 32], strides = [1, 1]} : vector<8x128xf32> to vector<8x32xf32>
    %159 = vector.extract_strided_slice %156 {offsets = [0, 0], sizes = [8, 96], strides = [1, 1]} : vector<8x128xf32> to vector<8x96xf32>
    %160 = tpu.concatenate %158, %159 in 1 : vector<8x32xf32>, vector<8x96xf32> -> vector<8x128xf32>
    %161 = arith.mulf %155, %160 : vector<8x128xf32>
    %162 = vector.extract_strided_slice %161 {offsets = [0, 96], sizes = [8, 32], strides = [1, 1]} : vector<8x128xf32> to vector<8x32xf32>
    %163 = vector.extract_strided_slice %161 {offsets = [0, 0], sizes = [8, 96], strides = [1, 1]} : vector<8x128xf32> to vector<8x96xf32>
    %164 = tpu.concatenate %162, %163 in 1 : vector<8x32xf32>, vector<8x96xf32> -> vector<8x128xf32>
    %165 = arith.addf %157, %164 : vector<8x128xf32>
    %166 = math.tanh %165 : vector<8x128xf32>
    %167 = vector.extract_strided_slice %166 {offsets = [0, 96], sizes = [8, 32], strides = [1, 1]} : vector<8x128xf32> to vector<8x32xf32>
    %168 = vector.extract_strided_slice %166 {offsets = [0, 0], sizes = [8, 96], strides = [1, 1]} : vector<8x128xf32> to vector<8x96xf32>
    %169 = tpu.concatenate %167, %168 in 1 : vector<8x32xf32>, vector<8x96xf32> -> vector<8x128xf32>
    %170 = arith.mulf %155, %169 : vector<8x128xf32>
    %171 = vector.extract_strided_slice %6 {offsets = [56, 0], sizes = [8, 128], strides = [1, 1]} : vector<64x128xf32> to vector<8x128xf32>
    %cst_24 = arith.constant dense<0.000000e+00> : vector<8x128xf32>
    %172 = tpu.matmul %170, %7, %cst_24 {dimension_numbers = #tpu.dot_dimension_numbers<[1], [0], [0], [1], [0, 0, 1, 1], [], []>} : vector<8x128xf32>, vector<128x128xf32>, vector<8x128xf32> -> vector<8x128xf32>
    %173 = arith.addf %171, %172 : vector<8x128xf32>
    %174 = arith.negf %173 : vector<8x128xf32>
    %175 = math.exp %174 : vector<8x128xf32>
    %cst_25 = arith.constant 1.000000e+00 : f32
    %176 = vector.broadcast %cst_25 : f32 to vector<8x128xf32>
    %177 = arith.addf %176, %175 : vector<8x128xf32>
    %178 = arith.divf %176, %177 : vector<8x128xf32>
    %179 = math.tanh %173 : vector<8x128xf32>
    %180 = arith.mulf %178, %165 : vector<8x128xf32>
    %181 = vector.extract_strided_slice %179 {offsets = [0, 96], sizes = [8, 32], strides = [1, 1]} : vector<8x128xf32> to vector<8x32xf32>
    %182 = vector.extract_strided_slice %179 {offsets = [0, 0], sizes = [8, 96], strides = [1, 1]} : vector<8x128xf32> to vector<8x96xf32>
    %183 = tpu.concatenate %181, %182 in 1 : vector<8x32xf32>, vector<8x96xf32> -> vector<8x128xf32>
    %184 = arith.mulf %178, %183 : vector<8x128xf32>
    %185 = vector.extract_strided_slice %184 {offsets = [0, 96], sizes = [8, 32], strides = [1, 1]} : vector<8x128xf32> to vector<8x32xf32>
    %186 = vector.extract_strided_slice %184 {offsets = [0, 0], sizes = [8, 96], strides = [1, 1]} : vector<8x128xf32> to vector<8x96xf32>
    %187 = tpu.concatenate %185, %186 in 1 : vector<8x32xf32>, vector<8x96xf32> -> vector<8x128xf32>
    %188 = arith.addf %180, %187 : vector<8x128xf32>
    %189 = math.tanh %188 : vector<8x128xf32>
    %190 = vector.extract_strided_slice %189 {offsets = [0, 96], sizes = [8, 32], strides = [1, 1]} : vector<8x128xf32> to vector<8x32xf32>
    %191 = vector.extract_strided_slice %189 {offsets = [0, 0], sizes = [8, 96], strides = [1, 1]} : vector<8x128xf32> to vector<8x96xf32>
    %192 = tpu.concatenate %190, %191 in 1 : vector<8x32xf32>, vector<8x96xf32> -> vector<8x128xf32>
    %193 = arith.mulf %178, %192 : vector<8x128xf32>
    %194 = tpu.concatenate %32, %55, %78, %101, %124, %147, %170, %193 in 0 : vector<8x128xf32>, vector<8x128xf32>, vector<8x128xf32>, vector<8x128xf32>, vector<8x128xf32>, vector<8x128xf32>, vector<8x128xf32>, vector<8x128xf32> -> vector<64x128xf32>
    %195 = tpu.concatenate %193, %170, %147, %124, %101, %78, %55, %32 in 0 : vector<8x128xf32>, vector<8x128xf32>, vector<8x128xf32>, vector<8x128xf32>, vector<8x128xf32>, vector<8x128xf32>, vector<8x128xf32>, vector<8x128xf32> -> vector<64x128xf32>
    %c0_26 = arith.constant 0 : index
    %c0_27 = arith.constant 0 : index
    %196 = vector.load %arg5[%c0_26, %c0_27] : memref<128x128xf32, #tpu.memory_space<vmem>>, vector<128x128xf32>
    %cst_28 = arith.constant dense<0.000000e+00> : vector<64x128xf32>
    %197 = tpu.matmul %194, %196, %cst_28 {dimension_numbers = #tpu.dot_dimension_numbers<[1], [0], [0], [1], [0, 0, 1, 1], [], []>} : vector<64x128xf32>, vector<128x128xf32>, vector<64x128xf32> -> vector<64x128xf32>
    %c0_29 = arith.constant 0 : index
    %c0_30 = arith.constant 0 : index
    %198 = vector.load %arg6[%c0_29, %c0_30] : memref<128x128xf32, #tpu.memory_space<vmem>>, vector<128x128xf32>
    %cst_31 = arith.constant dense<0.000000e+00> : vector<64x128xf32>
    %199 = tpu.matmul %195, %198, %cst_31 {dimension_numbers = #tpu.dot_dimension_numbers<[1], [0], [0], [1], [0, 0, 1, 1], [], []>} : vector<64x128xf32>, vector<128x128xf32>, vector<64x128xf32> -> vector<64x128xf32>
    %200 = arith.addf %197, %199 : vector<64x128xf32>
    %c0_32 = arith.constant 0 : index
    %c0_33 = arith.constant 0 : index
    %201 = vector.load %arg7[%c0_32, %c0_33] : memref<1x128xf32, #tpu.memory_space<vmem>>, vector<1x128xf32>
    %202 = vector.broadcast %201 : vector<1x128xf32> to vector<64x128xf32>
    %203 = arith.addf %200, %202 : vector<64x128xf32>
    %c0_34 = arith.constant 0 : index
    %c0_35 = arith.constant 0 : index
    %204 = vector.load %arg8[%c0_34, %c0_35] : memref<128x128xf32, #tpu.memory_space<vmem>>, vector<128x128xf32>
    %cst_36 = arith.constant 0.000000e+00 : f32
    %205 = vector.broadcast %cst_36 : f32 to vector<8x128xf32>
    %cst_37 = arith.constant 0.000000e+00 : f32
    %206 = vector.broadcast %cst_37 : f32 to vector<8x128xf32>
    %207 = vector.extract_strided_slice %203 {offsets = [0, 0], sizes = [8, 128], strides = [1, 1]} : vector<64x128xf32> to vector<8x128xf32>
    %cst_38 = arith.constant dense<0.000000e+00> : vector<8x128xf32>
    %208 = tpu.matmul %205, %204, %cst_38 {dimension_numbers = #tpu.dot_dimension_numbers<[1], [0], [0], [1], [0, 0, 1, 1], [], []>} : vector<8x128xf32>, vector<128x128xf32>, vector<8x128xf32> -> vector<8x128xf32>
    %209 = arith.addf %207, %208 : vector<8x128xf32>
    %210 = arith.negf %209 : vector<8x128xf32>
    %211 = math.exp %210 : vector<8x128xf32>
    %cst_39 = arith.constant 1.000000e+00 : f32
    %212 = vector.broadcast %cst_39 : f32 to vector<8x128xf32>
    %213 = arith.addf %212, %211 : vector<8x128xf32>
    %214 = arith.divf %212, %213 : vector<8x128xf32>
    %215 = math.tanh %209 : vector<8x128xf32>
    %216 = arith.mulf %214, %206 : vector<8x128xf32>
    %217 = vector.extract_strided_slice %215 {offsets = [0, 96], sizes = [8, 32], strides = [1, 1]} : vector<8x128xf32> to vector<8x32xf32>
    %218 = vector.extract_strided_slice %215 {offsets = [0, 0], sizes = [8, 96], strides = [1, 1]} : vector<8x128xf32> to vector<8x96xf32>
    %219 = tpu.concatenate %217, %218 in 1 : vector<8x32xf32>, vector<8x96xf32> -> vector<8x128xf32>
    %220 = arith.mulf %214, %219 : vector<8x128xf32>
    %221 = vector.extract_strided_slice %220 {offsets = [0, 96], sizes = [8, 32], strides = [1, 1]} : vector<8x128xf32> to vector<8x32xf32>
    %222 = vector.extract_strided_slice %220 {offsets = [0, 0], sizes = [8, 96], strides = [1, 1]} : vector<8x128xf32> to vector<8x96xf32>
    %223 = tpu.concatenate %221, %222 in 1 : vector<8x32xf32>, vector<8x96xf32> -> vector<8x128xf32>
    %224 = arith.addf %216, %223 : vector<8x128xf32>
    %225 = math.tanh %224 : vector<8x128xf32>
    %226 = vector.extract_strided_slice %225 {offsets = [0, 96], sizes = [8, 32], strides = [1, 1]} : vector<8x128xf32> to vector<8x32xf32>
    %227 = vector.extract_strided_slice %225 {offsets = [0, 0], sizes = [8, 96], strides = [1, 1]} : vector<8x128xf32> to vector<8x96xf32>
    %228 = tpu.concatenate %226, %227 in 1 : vector<8x32xf32>, vector<8x96xf32> -> vector<8x128xf32>
    %229 = arith.mulf %214, %228 : vector<8x128xf32>
    %230 = vector.extract_strided_slice %203 {offsets = [8, 0], sizes = [8, 128], strides = [1, 1]} : vector<64x128xf32> to vector<8x128xf32>
    %cst_40 = arith.constant dense<0.000000e+00> : vector<8x128xf32>
    %231 = tpu.matmul %229, %204, %cst_40 {dimension_numbers = #tpu.dot_dimension_numbers<[1], [0], [0], [1], [0, 0, 1, 1], [], []>} : vector<8x128xf32>, vector<128x128xf32>, vector<8x128xf32> -> vector<8x128xf32>
    %232 = arith.addf %230, %231 : vector<8x128xf32>
    %233 = arith.negf %232 : vector<8x128xf32>
    %234 = math.exp %233 : vector<8x128xf32>
    %cst_41 = arith.constant 1.000000e+00 : f32
    %235 = vector.broadcast %cst_41 : f32 to vector<8x128xf32>
    %236 = arith.addf %235, %234 : vector<8x128xf32>
    %237 = arith.divf %235, %236 : vector<8x128xf32>
    %238 = math.tanh %232 : vector<8x128xf32>
    %239 = arith.mulf %237, %224 : vector<8x128xf32>
    %240 = vector.extract_strided_slice %238 {offsets = [0, 96], sizes = [8, 32], strides = [1, 1]} : vector<8x128xf32> to vector<8x32xf32>
    %241 = vector.extract_strided_slice %238 {offsets = [0, 0], sizes = [8, 96], strides = [1, 1]} : vector<8x128xf32> to vector<8x96xf32>
    %242 = tpu.concatenate %240, %241 in 1 : vector<8x32xf32>, vector<8x96xf32> -> vector<8x128xf32>
    %243 = arith.mulf %237, %242 : vector<8x128xf32>
    %244 = vector.extract_strided_slice %243 {offsets = [0, 96], sizes = [8, 32], strides = [1, 1]} : vector<8x128xf32> to vector<8x32xf32>
    %245 = vector.extract_strided_slice %243 {offsets = [0, 0], sizes = [8, 96], strides = [1, 1]} : vector<8x128xf32> to vector<8x96xf32>
    %246 = tpu.concatenate %244, %245 in 1 : vector<8x32xf32>, vector<8x96xf32> -> vector<8x128xf32>
    %247 = arith.addf %239, %246 : vector<8x128xf32>
    %248 = math.tanh %247 : vector<8x128xf32>
    %249 = vector.extract_strided_slice %248 {offsets = [0, 96], sizes = [8, 32], strides = [1, 1]} : vector<8x128xf32> to vector<8x32xf32>
    %250 = vector.extract_strided_slice %248 {offsets = [0, 0], sizes = [8, 96], strides = [1, 1]} : vector<8x128xf32> to vector<8x96xf32>
    %251 = tpu.concatenate %249, %250 in 1 : vector<8x32xf32>, vector<8x96xf32> -> vector<8x128xf32>
    %252 = arith.mulf %237, %251 : vector<8x128xf32>
    %253 = vector.extract_strided_slice %203 {offsets = [16, 0], sizes = [8, 128], strides = [1, 1]} : vector<64x128xf32> to vector<8x128xf32>
    %cst_42 = arith.constant dense<0.000000e+00> : vector<8x128xf32>
    %254 = tpu.matmul %252, %204, %cst_42 {dimension_numbers = #tpu.dot_dimension_numbers<[1], [0], [0], [1], [0, 0, 1, 1], [], []>} : vector<8x128xf32>, vector<128x128xf32>, vector<8x128xf32> -> vector<8x128xf32>
    %255 = arith.addf %253, %254 : vector<8x128xf32>
    %256 = arith.negf %255 : vector<8x128xf32>
    %257 = math.exp %256 : vector<8x128xf32>
    %cst_43 = arith.constant 1.000000e+00 : f32
    %258 = vector.broadcast %cst_43 : f32 to vector<8x128xf32>
    %259 = arith.addf %258, %257 : vector<8x128xf32>
    %260 = arith.divf %258, %259 : vector<8x128xf32>
    %261 = math.tanh %255 : vector<8x128xf32>
    %262 = arith.mulf %260, %247 : vector<8x128xf32>
    %263 = vector.extract_strided_slice %261 {offsets = [0, 96], sizes = [8, 32], strides = [1, 1]} : vector<8x128xf32> to vector<8x32xf32>
    %264 = vector.extract_strided_slice %261 {offsets = [0, 0], sizes = [8, 96], strides = [1, 1]} : vector<8x128xf32> to vector<8x96xf32>
    %265 = tpu.concatenate %263, %264 in 1 : vector<8x32xf32>, vector<8x96xf32> -> vector<8x128xf32>
    %266 = arith.mulf %260, %265 : vector<8x128xf32>
    %267 = vector.extract_strided_slice %266 {offsets = [0, 96], sizes = [8, 32], strides = [1, 1]} : vector<8x128xf32> to vector<8x32xf32>
    %268 = vector.extract_strided_slice %266 {offsets = [0, 0], sizes = [8, 96], strides = [1, 1]} : vector<8x128xf32> to vector<8x96xf32>
    %269 = tpu.concatenate %267, %268 in 1 : vector<8x32xf32>, vector<8x96xf32> -> vector<8x128xf32>
    %270 = arith.addf %262, %269 : vector<8x128xf32>
    %271 = math.tanh %270 : vector<8x128xf32>
    %272 = vector.extract_strided_slice %271 {offsets = [0, 96], sizes = [8, 32], strides = [1, 1]} : vector<8x128xf32> to vector<8x32xf32>
    %273 = vector.extract_strided_slice %271 {offsets = [0, 0], sizes = [8, 96], strides = [1, 1]} : vector<8x128xf32> to vector<8x96xf32>
    %274 = tpu.concatenate %272, %273 in 1 : vector<8x32xf32>, vector<8x96xf32> -> vector<8x128xf32>
    %275 = arith.mulf %260, %274 : vector<8x128xf32>
    %276 = vector.extract_strided_slice %203 {offsets = [24, 0], sizes = [8, 128], strides = [1, 1]} : vector<64x128xf32> to vector<8x128xf32>
    %cst_44 = arith.constant dense<0.000000e+00> : vector<8x128xf32>
    %277 = tpu.matmul %275, %204, %cst_44 {dimension_numbers = #tpu.dot_dimension_numbers<[1], [0], [0], [1], [0, 0, 1, 1], [], []>} : vector<8x128xf32>, vector<128x128xf32>, vector<8x128xf32> -> vector<8x128xf32>
    %278 = arith.addf %276, %277 : vector<8x128xf32>
    %279 = arith.negf %278 : vector<8x128xf32>
    %280 = math.exp %279 : vector<8x128xf32>
    %cst_45 = arith.constant 1.000000e+00 : f32
    %281 = vector.broadcast %cst_45 : f32 to vector<8x128xf32>
    %282 = arith.addf %281, %280 : vector<8x128xf32>
    %283 = arith.divf %281, %282 : vector<8x128xf32>
    %284 = math.tanh %278 : vector<8x128xf32>
    %285 = arith.mulf %283, %270 : vector<8x128xf32>
    %286 = vector.extract_strided_slice %284 {offsets = [0, 96], sizes = [8, 32], strides = [1, 1]} : vector<8x128xf32> to vector<8x32xf32>
    %287 = vector.extract_strided_slice %284 {offsets = [0, 0], sizes = [8, 96], strides = [1, 1]} : vector<8x128xf32> to vector<8x96xf32>
    %288 = tpu.concatenate %286, %287 in 1 : vector<8x32xf32>, vector<8x96xf32> -> vector<8x128xf32>
    %289 = arith.mulf %283, %288 : vector<8x128xf32>
    %290 = vector.extract_strided_slice %289 {offsets = [0, 96], sizes = [8, 32], strides = [1, 1]} : vector<8x128xf32> to vector<8x32xf32>
    %291 = vector.extract_strided_slice %289 {offsets = [0, 0], sizes = [8, 96], strides = [1, 1]} : vector<8x128xf32> to vector<8x96xf32>
    %292 = tpu.concatenate %290, %291 in 1 : vector<8x32xf32>, vector<8x96xf32> -> vector<8x128xf32>
    %293 = arith.addf %285, %292 : vector<8x128xf32>
    %294 = math.tanh %293 : vector<8x128xf32>
    %295 = vector.extract_strided_slice %294 {offsets = [0, 96], sizes = [8, 32], strides = [1, 1]} : vector<8x128xf32> to vector<8x32xf32>
    %296 = vector.extract_strided_slice %294 {offsets = [0, 0], sizes = [8, 96], strides = [1, 1]} : vector<8x128xf32> to vector<8x96xf32>
    %297 = tpu.concatenate %295, %296 in 1 : vector<8x32xf32>, vector<8x96xf32> -> vector<8x128xf32>
    %298 = arith.mulf %283, %297 : vector<8x128xf32>
    %299 = vector.extract_strided_slice %203 {offsets = [32, 0], sizes = [8, 128], strides = [1, 1]} : vector<64x128xf32> to vector<8x128xf32>
    %cst_46 = arith.constant dense<0.000000e+00> : vector<8x128xf32>
    %300 = tpu.matmul %298, %204, %cst_46 {dimension_numbers = #tpu.dot_dimension_numbers<[1], [0], [0], [1], [0, 0, 1, 1], [], []>} : vector<8x128xf32>, vector<128x128xf32>, vector<8x128xf32> -> vector<8x128xf32>
    %301 = arith.addf %299, %300 : vector<8x128xf32>
    %302 = arith.negf %301 : vector<8x128xf32>
    %303 = math.exp %302 : vector<8x128xf32>
    %cst_47 = arith.constant 1.000000e+00 : f32
    %304 = vector.broadcast %cst_47 : f32 to vector<8x128xf32>
    %305 = arith.addf %304, %303 : vector<8x128xf32>
    %306 = arith.divf %304, %305 : vector<8x128xf32>
    %307 = math.tanh %301 : vector<8x128xf32>
    %308 = arith.mulf %306, %293 : vector<8x128xf32>
    %309 = vector.extract_strided_slice %307 {offsets = [0, 96], sizes = [8, 32], strides = [1, 1]} : vector<8x128xf32> to vector<8x32xf32>
    %310 = vector.extract_strided_slice %307 {offsets = [0, 0], sizes = [8, 96], strides = [1, 1]} : vector<8x128xf32> to vector<8x96xf32>
    %311 = tpu.concatenate %309, %310 in 1 : vector<8x32xf32>, vector<8x96xf32> -> vector<8x128xf32>
    %312 = arith.mulf %306, %311 : vector<8x128xf32>
    %313 = vector.extract_strided_slice %312 {offsets = [0, 96], sizes = [8, 32], strides = [1, 1]} : vector<8x128xf32> to vector<8x32xf32>
    %314 = vector.extract_strided_slice %312 {offsets = [0, 0], sizes = [8, 96], strides = [1, 1]} : vector<8x128xf32> to vector<8x96xf32>
    %315 = tpu.concatenate %313, %314 in 1 : vector<8x32xf32>, vector<8x96xf32> -> vector<8x128xf32>
    %316 = arith.addf %308, %315 : vector<8x128xf32>
    %317 = math.tanh %316 : vector<8x128xf32>
    %318 = vector.extract_strided_slice %317 {offsets = [0, 96], sizes = [8, 32], strides = [1, 1]} : vector<8x128xf32> to vector<8x32xf32>
    %319 = vector.extract_strided_slice %317 {offsets = [0, 0], sizes = [8, 96], strides = [1, 1]} : vector<8x128xf32> to vector<8x96xf32>
    %320 = tpu.concatenate %318, %319 in 1 : vector<8x32xf32>, vector<8x96xf32> -> vector<8x128xf32>
    %321 = arith.mulf %306, %320 : vector<8x128xf32>
    %322 = vector.extract_strided_slice %203 {offsets = [40, 0], sizes = [8, 128], strides = [1, 1]} : vector<64x128xf32> to vector<8x128xf32>
    %cst_48 = arith.constant dense<0.000000e+00> : vector<8x128xf32>
    %323 = tpu.matmul %321, %204, %cst_48 {dimension_numbers = #tpu.dot_dimension_numbers<[1], [0], [0], [1], [0, 0, 1, 1], [], []>} : vector<8x128xf32>, vector<128x128xf32>, vector<8x128xf32> -> vector<8x128xf32>
    %324 = arith.addf %322, %323 : vector<8x128xf32>
    %325 = arith.negf %324 : vector<8x128xf32>
    %326 = math.exp %325 : vector<8x128xf32>
    %cst_49 = arith.constant 1.000000e+00 : f32
    %327 = vector.broadcast %cst_49 : f32 to vector<8x128xf32>
    %328 = arith.addf %327, %326 : vector<8x128xf32>
    %329 = arith.divf %327, %328 : vector<8x128xf32>
    %330 = math.tanh %324 : vector<8x128xf32>
    %331 = arith.mulf %329, %316 : vector<8x128xf32>
    %332 = vector.extract_strided_slice %330 {offsets = [0, 96], sizes = [8, 32], strides = [1, 1]} : vector<8x128xf32> to vector<8x32xf32>
    %333 = vector.extract_strided_slice %330 {offsets = [0, 0], sizes = [8, 96], strides = [1, 1]} : vector<8x128xf32> to vector<8x96xf32>
    %334 = tpu.concatenate %332, %333 in 1 : vector<8x32xf32>, vector<8x96xf32> -> vector<8x128xf32>
    %335 = arith.mulf %329, %334 : vector<8x128xf32>
    %336 = vector.extract_strided_slice %335 {offsets = [0, 96], sizes = [8, 32], strides = [1, 1]} : vector<8x128xf32> to vector<8x32xf32>
    %337 = vector.extract_strided_slice %335 {offsets = [0, 0], sizes = [8, 96], strides = [1, 1]} : vector<8x128xf32> to vector<8x96xf32>
    %338 = tpu.concatenate %336, %337 in 1 : vector<8x32xf32>, vector<8x96xf32> -> vector<8x128xf32>
    %339 = arith.addf %331, %338 : vector<8x128xf32>
    %340 = math.tanh %339 : vector<8x128xf32>
    %341 = vector.extract_strided_slice %340 {offsets = [0, 96], sizes = [8, 32], strides = [1, 1]} : vector<8x128xf32> to vector<8x32xf32>
    %342 = vector.extract_strided_slice %340 {offsets = [0, 0], sizes = [8, 96], strides = [1, 1]} : vector<8x128xf32> to vector<8x96xf32>
    %343 = tpu.concatenate %341, %342 in 1 : vector<8x32xf32>, vector<8x96xf32> -> vector<8x128xf32>
    %344 = arith.mulf %329, %343 : vector<8x128xf32>
    %345 = vector.extract_strided_slice %203 {offsets = [48, 0], sizes = [8, 128], strides = [1, 1]} : vector<64x128xf32> to vector<8x128xf32>
    %cst_50 = arith.constant dense<0.000000e+00> : vector<8x128xf32>
    %346 = tpu.matmul %344, %204, %cst_50 {dimension_numbers = #tpu.dot_dimension_numbers<[1], [0], [0], [1], [0, 0, 1, 1], [], []>} : vector<8x128xf32>, vector<128x128xf32>, vector<8x128xf32> -> vector<8x128xf32>
    %347 = arith.addf %345, %346 : vector<8x128xf32>
    %348 = arith.negf %347 : vector<8x128xf32>
    %349 = math.exp %348 : vector<8x128xf32>
    %cst_51 = arith.constant 1.000000e+00 : f32
    %350 = vector.broadcast %cst_51 : f32 to vector<8x128xf32>
    %351 = arith.addf %350, %349 : vector<8x128xf32>
    %352 = arith.divf %350, %351 : vector<8x128xf32>
    %353 = math.tanh %347 : vector<8x128xf32>
    %354 = arith.mulf %352, %339 : vector<8x128xf32>
    %355 = vector.extract_strided_slice %353 {offsets = [0, 96], sizes = [8, 32], strides = [1, 1]} : vector<8x128xf32> to vector<8x32xf32>
    %356 = vector.extract_strided_slice %353 {offsets = [0, 0], sizes = [8, 96], strides = [1, 1]} : vector<8x128xf32> to vector<8x96xf32>
    %357 = tpu.concatenate %355, %356 in 1 : vector<8x32xf32>, vector<8x96xf32> -> vector<8x128xf32>
    %358 = arith.mulf %352, %357 : vector<8x128xf32>
    %359 = vector.extract_strided_slice %358 {offsets = [0, 96], sizes = [8, 32], strides = [1, 1]} : vector<8x128xf32> to vector<8x32xf32>
    %360 = vector.extract_strided_slice %358 {offsets = [0, 0], sizes = [8, 96], strides = [1, 1]} : vector<8x128xf32> to vector<8x96xf32>
    %361 = tpu.concatenate %359, %360 in 1 : vector<8x32xf32>, vector<8x96xf32> -> vector<8x128xf32>
    %362 = arith.addf %354, %361 : vector<8x128xf32>
    %363 = math.tanh %362 : vector<8x128xf32>
    %364 = vector.extract_strided_slice %363 {offsets = [0, 96], sizes = [8, 32], strides = [1, 1]} : vector<8x128xf32> to vector<8x32xf32>
    %365 = vector.extract_strided_slice %363 {offsets = [0, 0], sizes = [8, 96], strides = [1, 1]} : vector<8x128xf32> to vector<8x96xf32>
    %366 = tpu.concatenate %364, %365 in 1 : vector<8x32xf32>, vector<8x96xf32> -> vector<8x128xf32>
    %367 = arith.mulf %352, %366 : vector<8x128xf32>
    %368 = vector.extract_strided_slice %203 {offsets = [56, 0], sizes = [8, 128], strides = [1, 1]} : vector<64x128xf32> to vector<8x128xf32>
    %cst_52 = arith.constant dense<0.000000e+00> : vector<8x128xf32>
    %369 = tpu.matmul %367, %204, %cst_52 {dimension_numbers = #tpu.dot_dimension_numbers<[1], [0], [0], [1], [0, 0, 1, 1], [], []>} : vector<8x128xf32>, vector<128x128xf32>, vector<8x128xf32> -> vector<8x128xf32>
    %370 = arith.addf %368, %369 : vector<8x128xf32>
    %371 = arith.negf %370 : vector<8x128xf32>
    %372 = math.exp %371 : vector<8x128xf32>
    %cst_53 = arith.constant 1.000000e+00 : f32
    %373 = vector.broadcast %cst_53 : f32 to vector<8x128xf32>
    %374 = arith.addf %373, %372 : vector<8x128xf32>
    %375 = arith.divf %373, %374 : vector<8x128xf32>
    %376 = math.tanh %370 : vector<8x128xf32>
    %377 = arith.mulf %375, %362 : vector<8x128xf32>
    %378 = vector.extract_strided_slice %376 {offsets = [0, 96], sizes = [8, 32], strides = [1, 1]} : vector<8x128xf32> to vector<8x32xf32>
    %379 = vector.extract_strided_slice %376 {offsets = [0, 0], sizes = [8, 96], strides = [1, 1]} : vector<8x128xf32> to vector<8x96xf32>
    %380 = tpu.concatenate %378, %379 in 1 : vector<8x32xf32>, vector<8x96xf32> -> vector<8x128xf32>
    %381 = arith.mulf %375, %380 : vector<8x128xf32>
    %382 = vector.extract_strided_slice %381 {offsets = [0, 96], sizes = [8, 32], strides = [1, 1]} : vector<8x128xf32> to vector<8x32xf32>
    %383 = vector.extract_strided_slice %381 {offsets = [0, 0], sizes = [8, 96], strides = [1, 1]} : vector<8x128xf32> to vector<8x96xf32>
    %384 = tpu.concatenate %382, %383 in 1 : vector<8x32xf32>, vector<8x96xf32> -> vector<8x128xf32>
    %385 = arith.addf %377, %384 : vector<8x128xf32>
    %386 = math.tanh %385 : vector<8x128xf32>
    %387 = vector.extract_strided_slice %386 {offsets = [0, 96], sizes = [8, 32], strides = [1, 1]} : vector<8x128xf32> to vector<8x32xf32>
    %388 = vector.extract_strided_slice %386 {offsets = [0, 0], sizes = [8, 96], strides = [1, 1]} : vector<8x128xf32> to vector<8x96xf32>
    %389 = tpu.concatenate %387, %388 in 1 : vector<8x32xf32>, vector<8x96xf32> -> vector<8x128xf32>
    %390 = arith.mulf %375, %389 : vector<8x128xf32>
    %391 = tpu.concatenate %229, %252, %275, %298, %321, %344, %367, %390 in 0 : vector<8x128xf32>, vector<8x128xf32>, vector<8x128xf32>, vector<8x128xf32>, vector<8x128xf32>, vector<8x128xf32>, vector<8x128xf32>, vector<8x128xf32> -> vector<64x128xf32>
    %392 = tpu.concatenate %390, %367, %344, %321, %298, %275, %252, %229 in 0 : vector<8x128xf32>, vector<8x128xf32>, vector<8x128xf32>, vector<8x128xf32>, vector<8x128xf32>, vector<8x128xf32>, vector<8x128xf32>, vector<8x128xf32> -> vector<64x128xf32>
    %c0_54 = arith.constant 0 : index
    %c0_55 = arith.constant 0 : index
    %393 = vector.load %arg9[%c0_54, %c0_55] : memref<128x128xf32, #tpu.memory_space<vmem>>, vector<128x128xf32>
    %cst_56 = arith.constant dense<0.000000e+00> : vector<64x128xf32>
    %394 = tpu.matmul %391, %393, %cst_56 {dimension_numbers = #tpu.dot_dimension_numbers<[1], [0], [0], [1], [0, 0, 1, 1], [], []>} : vector<64x128xf32>, vector<128x128xf32>, vector<64x128xf32> -> vector<64x128xf32>
    %c0_57 = arith.constant 0 : index
    %c0_58 = arith.constant 0 : index
    %395 = vector.load %arg10[%c0_57, %c0_58] : memref<128x128xf32, #tpu.memory_space<vmem>>, vector<128x128xf32>
    %cst_59 = arith.constant dense<0.000000e+00> : vector<64x128xf32>
    %396 = tpu.matmul %392, %395, %cst_59 {dimension_numbers = #tpu.dot_dimension_numbers<[1], [0], [0], [1], [0, 0, 1, 1], [], []>} : vector<64x128xf32>, vector<128x128xf32>, vector<64x128xf32> -> vector<64x128xf32>
    %397 = arith.addf %394, %396 : vector<64x128xf32>
    %c0_60 = arith.constant 0 : index
    %c0_61 = arith.constant 0 : index
    %398 = vector.load %arg11[%c0_60, %c0_61] : memref<1x128xf32, #tpu.memory_space<vmem>>, vector<1x128xf32>
    %399 = vector.broadcast %398 : vector<1x128xf32> to vector<64x128xf32>
    %400 = arith.addf %397, %399 : vector<64x128xf32>
    %c0_62 = arith.constant 0 : index
    %c0_63 = arith.constant 0 : index
    %c0_64 = arith.constant 0 : index
    %401 = vector.load %arg12[%c0_62, %c0_63, %c0_64] : memref<1x64x128xf32, #tpu.memory_space<vmem>>, vector<1x64x128xf32>
    %402 = vector.shape_cast %401 : vector<1x64x128xf32> to vector<64x128xf32>
    %403 = vector.shape_cast %400 : vector<64x128xf32> to vector<1x64x128xf32>
    tpu.vector_store %arg12[%c0_62, %c0_63, %c0_64], %403 {strides = array<i32>} : memref<1x64x128xf32, #tpu.memory_space<vmem>>, vector<1x64x128xf32>,
    return
  }
  func.func @transform_0(%arg0: i32) -> (i32, i32, i32) {
    %c0_i32 = arith.constant 0 : i32
    %c0_i32_0 = arith.constant 0 : i32
    %c0_i32_1 = arith.constant 0 : i32
    return %arg0, %c0_i32, %c0_i32_0 : i32, i32, i32
  }
  func.func @transform_1(%arg0: i32) -> (i32, i32) {
    %c0_i32 = arith.constant 0 : i32
    %c0_i32_0 = arith.constant 0 : i32
    %c0_i32_1 = arith.constant 0 : i32
    return %c0_i32, %c0_i32_0 : i32, i32
  }
  func.func @transform_2(%arg0: i32) -> (i32, i32) {
    %c0_i32 = arith.constant 0 : i32
    %c0_i32_0 = arith.constant 0 : i32
    %c0_i32_1 = arith.constant 0 : i32
    return %c0_i32, %c0_i32_0 : i32, i32
  }
  func.func @transform_3(%arg0: i32) -> (i32, i32) {
    %c0_i32 = arith.constant 0 : i32
    %c0_i32_0 = arith.constant 0 : i32
    %c0_i32_1 = arith.constant 0 : i32
    return %c0_i32, %c0_i32_0 : i32, i32
  }
  func.func @transform_4(%arg0: i32) -> (i32, i32) {
    %c0_i32 = arith.constant 0 : i32
    %c0_i32_0 = arith.constant 0 : i32
    %c0_i32_1 = arith.constant 0 : i32
    return %c0_i32, %c0_i32_0 : i32, i32
  }
  func.func @transform_5(%arg0: i32) -> (i32, i32) {
    %c0_i32 = arith.constant 0 : i32
    %c0_i32_0 = arith.constant 0 : i32
    %c0_i32_1 = arith.constant 0 : i32
    return %c0_i32, %c0_i32_0 : i32, i32
  }
  func.func @transform_6(%arg0: i32) -> (i32, i32) {
    %c0_i32 = arith.constant 0 : i32
    %c0_i32_0 = arith.constant 0 : i32
    %c0_i32_1 = arith.constant 0 : i32
    return %c0_i32, %c0_i32_0 : i32, i32
  }
  func.func @transform_7(%arg0: i32) -> (i32, i32) {
    %c0_i32 = arith.constant 0 : i32
    %c0_i32_0 = arith.constant 0 : i32
    %c0_i32_1 = arith.constant 0 : i32
    return %c0_i32, %c0_i32_0 : i32, i32
  }
  func.func @transform_8(%arg0: i32) -> (i32, i32) {
    %c0_i32 = arith.constant 0 : i32
    %c0_i32_0 = arith.constant 0 : i32
    %c0_i32_1 = arith.constant 0 : i32
    return %c0_i32, %c0_i32_0 : i32, i32
  }
  func.func @transform_9(%arg0: i32) -> (i32, i32) {
    %c0_i32 = arith.constant 0 : i32
    %c0_i32_0 = arith.constant 0 : i32
    %c0_i32_1 = arith.constant 0 : i32
    return %c0_i32, %c0_i32_0 : i32, i32
  }
  func.func @transform_10(%arg0: i32) -> (i32, i32) {
    %c0_i32 = arith.constant 0 : i32
    %c0_i32_0 = arith.constant 0 : i32
    %c0_i32_1 = arith.constant 0 : i32
    return %c0_i32, %c0_i32_0 : i32, i32
  }
  func.func @transform_11(%arg0: i32) -> (i32, i32, i32) {
    %c0_i32 = arith.constant 0 : i32
    %c0_i32_0 = arith.constant 0 : i32
    %c0_i32_1 = arith.constant 0 : i32
    return %arg0, %c0_i32, %c0_i32_0 : i32, i32, i32
  }
}

</mosaic_0001>

<bundles_post_ra>
// kernel: tpu_custom_call.1
= control target key start
LH: loop header
LB: loop body
LE: loop exit
PB: predicated region body
PF: predicated region fallthrough
CT: control target
= control target key end

     0   :  { %16 = vsyncpa [#allocation3], 0  ;;  %s2480_s0 = inlined_call_operand.vmem [shape: f32[1,64,6], index: 0, kind: input, shape index: {}]   ;;  %s2481_s1 = inlined_call_operand.vmem [shape: f32[6,128], index: 1, kind: input, shape index: {}]   ;;  %s2482_s2 = inlined_call_operand.hbm [shape: f32[128,128], index: 2, kind: input, shape index: {}]   ;;  %s2483_s3 = inlined_call_operand.vmem [shape: f32[1,128], index: 3, kind: input, shape index: {}]   ;;  %s2484_s4 = inlined_call_operand.hbm [shape: f32[128,128], index: 4, kind: input, shape index: {}]   ;;  %s2485_s5 = inlined_call_operand.hbm [shape: f32[128,128], index: 5, kind: input, shape index: {}]   ;;  %s2486_s6 = inlined_call_operand.vmem [shape: f32[1,128], index: 6, kind: input, shape index: {}]   ;;  %s2487_s7 = inlined_call_operand.hbm [shape: f32[128,128], index: 7, kind: input, shape index: {}]   ;;  %s2488_s8 = inlined_call_operand.hbm [shape: f32[128,128], index: 8, kind: input, shape index: {}]   ;;  %s2489_s9 = inlined_call_operand.hbm [shape: f32[128,128], index: 9, kind: input, shape index: {}]   ;;  %s2490_s10 = inlined_call_operand.vmem [shape: f32[1,128], index: 10, kind: input, shape index: {}]   ;;  %s2491_s11 = inlined_call_operand.hbm [shape: f32[1,64,128], index: 11, kind: output, shape index: {}]  }
   0x1   :  { %17 = vsyncpa [#allocation6], 0 }
   0x2   :  { %18 = vsyncpa [#allocation9], 0 }
   0x3   :  { %19 = vsyncpa [#allocation12], 0 }
   0x4   :  { %20 = vsyncpa [#allocation4], 0  ;;  %s44_s19 = sshll.u32 %s2484_s4, 4  ;;  %s1803_s20 = smov [#allocation5]   ;;  %s45_s19 = int_to_ptr.hbm [resolvable:$true] %s44_s19 }
   0x5   :  { %s46_s21 = sshll.u32 %s1803_s20, 4  ;;  %s72_s24 = sshll.u32 %s2487_s7, 4  ;;  %s47_s21 = int_to_ptr.vmem [resolvable:$true] %s46_s21  ;;  %s73_s24 = int_to_ptr.hbm [resolvable:$true] %s72_s24 }
   0x6   :  { %s1804_s25 = smov 128   ;;  %s1805_s26 = smov 8  }
   0x7   :  { %52 = dma.hbm_to_vmem [thread:$0]  %s45_s19, 2048, %s47_s21, [#allocation6], %s1804_s25, %s1804_s25, %s1805_s26  }
   0x8   :  { %s1806_s27 = smov [#allocation8]   ;;  %s29_s4 = sshll.u32 %s2482_s2, 4  ;;  %s30_s4 = int_to_ptr.hbm [resolvable:$true] %s29_s4 }
   0x9   :  { %s74_s28 = sshll.u32 %s1806_s27, 4  ;;  %s57_s13 = sshll.u32 %s2485_s5, 4  ;;  %s75_s28 = int_to_ptr.vmem [resolvable:$true] %s74_s28  ;;  %s58_s13 = int_to_ptr.hbm [resolvable:$true] %s57_s13 }
   0xa   :  { %80 = dma.hbm_to_vmem [thread:$0]  %s73_s24, 2048, %s75_s28, [#allocation9], %s1804_s25, %s1804_s25, %s1805_s26  }
   0xb   :  { %s1807_s14 = smov [#allocation2]   ;;  %s1808_s16 = smov [#allocation7]  }
   0xc   :  { %s31_s15 = sshll.u32 %s1807_s14, 4  ;;  %s59_s2 = sshll.u32 %s1808_s16, 4  ;;  %s32_s15 = int_to_ptr.vmem [resolvable:$true] %s31_s15  ;;  %s60_s2 = int_to_ptr.vmem [resolvable:$true] %s59_s2 }
   0xd   :  { %37 = dma.hbm_to_vmem [thread:$0]  %s30_s4, 2048, %s32_s15, [#allocation3], %s1804_s25, %s1804_s25, %s1805_s26  }
   0xe   :  { %s85_s19 = sshll.u32 %s2488_s8, 4  ;;  %s98_s21 = sshll.u32 %s2489_s9, 4  ;;  %s86_s19 = int_to_ptr.hbm [resolvable:$true] %s85_s19  ;;  %s99_s21 = int_to_ptr.hbm [resolvable:$true] %s98_s21 }
   0xf   :  { %65 = dma.hbm_to_vmem [thread:$0]  %s58_s13, 2048, %s60_s2, [#allocation6], %s1804_s25, %s1804_s25, %s1805_s26  }
  0x10   :  { %s1809_s22 = smov [#allocation10]   ;;  %s1810_s24 = smov [#allocation11]  }
  0x11   :  { %s87_s23 = sshll.u32 %s1809_s22, 4  ;;  %s100_s8 = sshll.u32 %s1810_s24, 4  ;;  %s88_s23 = int_to_ptr.vmem [resolvable:$true] %s87_s23  ;;  %s101_s8 = int_to_ptr.vmem [resolvable:$true] %s100_s8 }
  0x12   :  { %93 = dma.hbm_to_vmem [thread:$0]  %s86_s19, 2048, %s88_s23, [#allocation9], %s1804_s25, %s1804_s25, %s1805_s26  }
  0x13   :  { %106 = dma.hbm_to_vmem [thread:$0]  %s99_s21, 2048, %s101_s8, [#allocation12], %s1804_s25, %s1804_s25, %s1805_s26  }
  0x14   :  { %1793 = dma.done.wait [#allocation3], 2048  }
  0x15   :  { %1794 = vsyncadd [#allocation3], 4294965248 }
  0x16   :  { %1795 = dma.done.wait [#allocation6], 4096  }
  0x17   :  { %1796 = vsyncadd [#allocation6], 4294963200 }
  0x18   :  { %1797 = dma.done.wait [#allocation9], 4096  }
  0x19   :  { %1798 = vsyncadd [#allocation9], 4294963200 }
  0x1a   :  { %1799 = dma.done.wait [#allocation12], 2048  }
  0x1b   :  { %1800 = vsyncadd [#allocation12], 4294965248  ;;  %v1910_v0 = vld [vmem:[#allocation2 + $0x78] sm:$0xff]  ;;  %v1912_v1 = vld [vmem:[#allocation2 + $0x70] sm:$0xff]  ;;  %vm171_vm0 = vcmask 1045504   ;;  %vm146_vm1 = vcmask 48128  }
  0x1c   :  { %232 = vmatpush.msra.mxu1 %v1910_v0  ;;  %464 = vmatpush.msra.mxu2 %v1910_v0  ;;  %v1916_v2 = vld [vmem:[#allocation2 + $0x68] sm:$0xff]  ;;  %v1921_v3 = vld [vmem:[#allocation2 + $0x60] sm:$0xff]  ;;  %v1931_v6 = vld [vmem:[#allocation2 + $0x58] sm:$0xff]  ;;  %v1811_v18 = vmov 0.0   ;;  %s1812_s4 = smov 32   ;;  %s1442_s27 = sshll.u32 %s2491_s11, 4  ;;  %s1443_s27 = int_to_ptr.hbm [resolvable:$true] %s1442_s27 }
  0x1d   :  { %522 = vmatpush.msra.mxu3 %v1910_v0  ;;  %v141_v4 = vld [vmem:[%s2481_s1] sm:$0x3f]  ;;  %v1937_v7 = vld [vmem:[#allocation2 + $0x50] sm:$0xff]  ;;  %v1943_v8 = vld [vmem:[#allocation2 + $0x48] sm:$0xff] }
  0x1e   :  { %233 = vmatpush.msra.mxu1 %v1912_v1  ;;  %465 = vmatpush.msra.mxu2 %v1912_v1  ;;  %v133_v5 = vld [vmem:[%s2480_s0] sm:$0xff]  ;;  %v1955_v10 = vld [vmem:[#allocation2 + $0x38] sm:$0xff]  ;;  %v1961_v11 = vld [vmem:[#allocation2 + $0x30] sm:$0xff] }
  0x1f   :  { %523 = vmatpush.msra.mxu3 %v1912_v1  ;;  %1458 = vmatpush.msk.msra.mxu0 %vm171_vm0, %v141_v4  ;;  %v1949_v9 = vld [vmem:[#allocation2 + $0x40] sm:$0xff]  ;;  %v1967_v12 = vld [vmem:[#allocation2 + $0x28] sm:$0xff]  ;;  %v1979_v14 = vld [vmem:[#allocation2 + $0x18] sm:$0xff] }
  0x20   :  { %234 = vmatpush.msra.mxu1 %v1916_v2  ;;  %1459 = vmatmul.msk.f32.vlgmr.msra.gmra.mxu0 %vm146_vm1, %v133_v5  ;;  %v1973_v13 = vld [vmem:[#allocation2 + $0x20] sm:$0xff]  ;;  %v1985_v15 = vld [vmem:[#allocation2 + $0x10] sm:$0xff]  ;;  %v1991_v16 = vld [vmem:[#allocation2 + $0x8] sm:$0xff] }
  0x21   :  { %466 = vmatpush.msra.mxu2 %v1916_v2  ;;  %290 = vmatpush.msrb.mxu0 %v1910_v0  ;;  %v1997_v17 = vld [vmem:[#allocation2] sm:$0xff]  ;;  %v134_v40 = vld [vmem:[%s2480_s0 + $0x8] sm:$0xff]  ;;  %v135_v41 = vld [vmem:[%s2480_s0 + $0x10] sm:$0xff] }
  0x22   :  { %235 = vmatpush.msra.mxu1 %v1921_v3  ;;  %524 = vmatpush.msra.mxu3 %v1916_v2  ;;  %v2065_v19 = vld [vmem:[%s2483_s3] ss:$0 sm:$0xff]  ;;  %v136_v42 = vld [vmem:[%s2480_s0 + $0x18] sm:$0xff]  ;;  %v138_v47 = vld [vmem:[%s2480_s0 + $0x28] sm:$0xff] }
  0x23   :  { %467 = vmatpush.msra.mxu2 %v1921_v3  ;;  %291 = vmatpush.msrb.mxu0 %v1912_v1  ;;  %v137_v45 = vld [vmem:[%s2480_s0 + $0x20] sm:$0xff]  ;;  %v139_v49 = vld [vmem:[%s2480_s0 + $0x30] sm:$0xff]  ;;  %v140_v50 = vld [vmem:[%s2480_s0 + $0x38] sm:$0xff] }
  0x24   :  { %236 = vmatpush.msra.mxu1 %v1931_v6  ;;  %525 = vmatpush.msra.mxu3 %v1921_v3 }
  0x25   :  { %468 = vmatpush.msra.mxu2 %v1931_v6  ;;  %292 = vmatpush.msrb.mxu0 %v1916_v2 }
  0x26   :  { %237 = vmatpush.msra.mxu1 %v1937_v7  ;;  %526 = vmatpush.msra.mxu3 %v1931_v6 }
  0x27   :  { %469 = vmatpush.msra.mxu2 %v1937_v7  ;;  %293 = vmatpush.msrb.mxu0 %v1921_v3 }
  0x28   :  { %238 = vmatpush.msra.mxu1 %v1943_v8  ;;  %527 = vmatpush.msra.mxu3 %v1937_v7 }
  0x29   :  { %470 = vmatpush.msra.mxu2 %v1943_v8  ;;  %294 = vmatpush.msrb.mxu0 %v1931_v6 }
  0x2a   :  { %239 = vmatpush.msra.mxu1 %v1949_v9  ;;  %528 = vmatpush.msra.mxu3 %v1943_v8 }
  0x2b   :  { %471 = vmatpush.msra.mxu2 %v1949_v9  ;;  %295 = vmatpush.msrb.mxu0 %v1937_v7 }
  0x2c   :  { %240 = vmatpush.msra.mxu1 %v1955_v10  ;;  %529 = vmatpush.msra.mxu3 %v1949_v9 }
  0x2d   :  { %472 = vmatpush.msra.mxu2 %v1955_v10  ;;  %296 = vmatpush.msrb.mxu0 %v1943_v8 }
  0x2e   :  { %241 = vmatpush.msra.mxu1 %v1961_v11  ;;  %530 = vmatpush.msra.mxu3 %v1955_v10 }
  0x2f   :  { %473 = vmatpush.msra.mxu2 %v1961_v11  ;;  %297 = vmatpush.msrb.mxu0 %v1949_v9 }
  0x30   :  { %242 = vmatpush.msra.mxu1 %v1967_v12  ;;  %531 = vmatpush.msra.mxu3 %v1961_v11 }
  0x31   :  { %474 = vmatpush.msra.mxu2 %v1967_v12  ;;  %298 = vmatpush.msrb.mxu0 %v1955_v10 }
  0x32   :  { %243 = vmatpush.msra.mxu1 %v1973_v13  ;;  %532 = vmatpush.msra.mxu3 %v1967_v12 }
  0x33   :  { %475 = vmatpush.msra.mxu2 %v1973_v13  ;;  %299 = vmatpush.msrb.mxu0 %v1961_v11 }
  0x34   :  { %244 = vmatpush.msra.mxu1 %v1979_v14  ;;  %533 = vmatpush.msra.mxu3 %v1973_v13 }
  0x35   :  { %476 = vmatpush.msra.mxu2 %v1979_v14  ;;  %300 = vmatpush.msrb.mxu0 %v1967_v12 }
  0x36   :  { %245 = vmatpush.msra.mxu1 %v1985_v15  ;;  %534 = vmatpush.msra.mxu3 %v1979_v14 }
  0x37   :  { %477 = vmatpush.msra.mxu2 %v1985_v15  ;;  %301 = vmatpush.msrb.mxu0 %v1973_v13 }
  0x38   :  { %246 = vmatpush.msra.mxu1 %v1991_v16  ;;  %535 = vmatpush.msra.mxu3 %v1985_v15 }
  0x39   :  { %478 = vmatpush.msra.mxu2 %v1991_v16  ;;  %302 = vmatpush.msrb.mxu0 %v1979_v14 }
  0x3a   :  { %247 = vmatpush.msra.mxu1 %v1997_v17  ;;  %536 = vmatpush.msra.mxu3 %v1991_v16 }
  0x3b   :  { %248 = vmatmul.f32.vlgmr.msra.gmra.mxu1 %v1811_v18  ;;  %479 = vmatpush.msra.mxu2 %v1997_v17 }
  0x3c   :  { %303 = vmatpush.msrb.mxu0 %v1985_v15  ;;  %348 = vmatpush.msrb.mxu1 %v1910_v0 }
  0x3d   :  { %537 = vmatpush.msra.mxu3 %v1997_v17  ;;  %1460 = vmatmul.msk.f32.gmra.mxu0 %vm146_vm1, %v134_v40 }
  0x3e   :  { %304 = vmatpush.msrb.mxu0 %v1991_v16  ;;  %349 = vmatpush.msrb.mxu1 %v1912_v1 }
  0x40   :  { %305 = vmatpush.msrb.mxu0 %v1997_v17  ;;  %350 = vmatpush.msrb.mxu1 %v1916_v2 }
  0x42   :  { %580 = vmatpush.msra.mxu0 %v1910_v0  ;;  %351 = vmatpush.msrb.mxu1 %v1921_v3 }
  0x44   :  { %581 = vmatpush.msra.mxu0 %v1912_v1  ;;  %352 = vmatpush.msrb.mxu1 %v1931_v6 }
  0x45   :  { %1461 = vmatmul.msk.f32.gmra.mxu0 %vm146_vm1, %v135_v41 }
  0x46   :  { %582 = vmatpush.msra.mxu0 %v1916_v2  ;;  %353 = vmatpush.msrb.mxu1 %v1937_v7 }
  0x48   :  { %583 = vmatpush.msra.mxu0 %v1921_v3  ;;  %354 = vmatpush.msrb.mxu1 %v1943_v8 }
  0x4a   :  { %584 = vmatpush.msra.mxu0 %v1931_v6  ;;  %355 = vmatpush.msrb.mxu1 %v1949_v9 }
  0x4c   :  { %585 = vmatpush.msra.mxu0 %v1937_v7  ;;  %356 = vmatpush.msrb.mxu1 %v1955_v10 }
  0x4d   :  { %1462 = vmatmul.msk.f32.gmra.mxu0 %vm146_vm1, %v136_v42 }
  0x4e   :  { %586 = vmatpush.msra.mxu0 %v1943_v8  ;;  %357 = vmatpush.msrb.mxu1 %v1961_v11 }
  0x50   :  { %587 = vmatpush.msra.mxu0 %v1949_v9  ;;  %358 = vmatpush.msrb.mxu1 %v1967_v12 }
  0x52   :  { %588 = vmatpush.msra.mxu0 %v1955_v10  ;;  %359 = vmatpush.msrb.mxu1 %v1973_v13 }
  0x54   :  { %589 = vmatpush.msra.mxu0 %v1961_v11  ;;  %360 = vmatpush.msrb.mxu1 %v1979_v14 }
  0x55   :  { %1463 = vmatmul.msk.f32.gmra.mxu0 %vm146_vm1, %v137_v45 }
  0x56   :  { %590 = vmatpush.msra.mxu0 %v1967_v12  ;;  %361 = vmatpush.msrb.mxu1 %v1985_v15 }
  0x58   :  { %591 = vmatpush.msra.mxu0 %v1973_v13  ;;  %362 = vmatpush.msrb.mxu1 %v1991_v16 }
  0x5a   :  { %592 = vmatpush.msra.mxu0 %v1979_v14  ;;  %363 = vmatpush.msrb.mxu1 %v1997_v17 }
  0x5c   :  { %406 = vmatpush.msra.mxu1 %v1910_v0  ;;  %593 = vmatpush.msra.mxu0 %v1985_v15 }
  0x5d   :  { %1464 = vmatmul.msk.f32.gmra.mxu0 %vm146_vm1, %v138_v47 }
  0x5e   :  { %407 = vmatpush.msra.mxu1 %v1912_v1  ;;  %594 = vmatpush.msra.mxu0 %v1991_v16 }
  0x60   :  { %408 = vmatpush.msra.mxu1 %v1916_v2  ;;  %595 = vmatpush.msra.mxu0 %v1997_v17 }
  0x62   :  { %409 = vmatpush.msra.mxu1 %v1921_v3 }
  0x64   :  { %410 = vmatpush.msra.mxu1 %v1931_v6 }
  0x65   :  { %1465 = vmatmul.msk.f32.gmra.mxu0 %vm146_vm1, %v139_v49 }
  0x66   :  { %411 = vmatpush.msra.mxu1 %v1937_v7 }
  0x68   :  { %412 = vmatpush.msra.mxu1 %v1943_v8 }
  0x6a   :  { %413 = vmatpush.msra.mxu1 %v1949_v9 }
  0x6c   :  { %414 = vmatpush.msra.mxu1 %v1955_v10 }
  0x6d   :  { %1466 = vmatmul.msk.f32.gmra.mxu0 %vm146_vm1, %v140_v50 }
  0x6e   :  { %415 = vmatpush.msra.mxu1 %v1961_v11 }
  0x70   :  { %416 = vmatpush.msra.mxu1 %v1967_v12 }
  0x72   :  { %417 = vmatpush.msra.mxu1 %v1973_v13 }
  0x74   :  { %418 = vmatpush.msra.mxu1 %v1979_v14 }
  0x76   :  { %419 = vmatpush.msra.mxu1 %v1985_v15 }
  0x78   :  { %420 = vmatpush.msra.mxu1 %v1991_v16 }
  0x7a   :  { %421 = vmatpush.msra.mxu1 %v1997_v17 }
  0x9d   :  { %v192_v20 = vpop.f32.mrf.mxu0 }
  0x9e   :  { %v193_v21 = vadd.f32 %v2065_v19, %v192_v20 }
  0xb8   :  { %v249_v22 = vpop.f32.mrf.mxu1 }
  0xb9   :  { %v252_v23 = vadd.f32 %v249_v22, %v193_v21 }
  0xba   :  { %v195_v53 = vpop.f32.mrf.mxu0 }
  0xbb   :  { %1497 = vtanh.f32 %v252_v23  ;;  %v1467_v25 = vmul.f32 -1.442695, %v252_v23  ;;  %v196_v60 = vadd.f32 %v2065_v19, %v195_v53 }
  0xbd   :  { %1499 = vpow2.f32 %v1467_v25 }
  0xc1   :  { %v1498_v24 = vpop.eup %1497 }
  0xc2   :  { %275 = vrot.lane.b32.xlu0 %v1498_v24, %s1812_s4  ;;  %v198_v54 = vpop.f32.mrf.mxu0 }
  0xc3   :  { %v1500_v26 = vpop.eup %1499 }
  0xc4   :  { %v256_v27 = vadd.f32 1.0, %v1500_v26 }
  0xc6   :  { %1501 = vrcp.f32 %v256_v27  ;;  %v268_v33 = vand.u32 2147483648, %v256_v27  ;;  %vm262_vm3 = vweird.f32 %v256_v27  ;;  %v266_v34 = vand.u32 2147483647, %v256_v27 }
  0xc8   :  { %v269_v36 = vor.u32 1.1754944e-38, %v268_v33  ;;  %vm267_vm5 = vcmp.eq.f32.partialorder %v266_v34, 8.507059e+37 }
  0xca   :  { %v2102_v55 = vpop.f32.mrf.mxu0 }
  0xcc   :  { %v1502_v28 = vpop.eup %1501 }
  0xcd   :  { %v258_v29 = vmul.f32 %v1502_v28, %v256_v27  ;;  %vm263_vm2 = vweird.f32 %v1502_v28 }
  0xce   :  { %vm264_vm4 = vmor %vm262_vm3, %vm263_vm2 }
  0xcf   :  { %v259_v30 = vsub.f32 1.0, %v258_v29 }
  0xd1   :  { %v260_v31 = vmul.f32 %v1502_v28, %v259_v30 }
  0xd2   :  { %v2104_v56 = vpop.f32.mrf.mxu0 }
  0xd3   :  { %v261_v32 = vadd.f32 %v1502_v28, %v260_v31 }
  0xd5   :  { %v265_v35 = vsel %vm264_vm4, %v1502_v28, %v261_v32 }
  0xd6   :  { %v270_v38 = vsel %vm267_vm5, %v269_v36, %v265_v35 }
  0xd7   :  { %v273_v43 = vmul.f32 0.0, %v270_v38 }
  0xda   :  { %v2106_v57 = vpop.f32.mrf.mxu0 }
  0xe2   :  { %v2108_v58 = vpop.f32.mrf.mxu0 }
  0xea   :  { %v2110_v59 = vpop.f32.mrf.mxu0 }
 0x134   :  { %v276_v37 = vpop.permute.xlu0 %275 }
 0x135   :  { %v278_v39 = vmul.f32 %v276_v37, %v270_v38 }
 0x137   :  { %280 = vrot.lane.b32.xlu0 %v278_v39, %s1812_s4 }
 0x1a9   :  { %v281_v44 = vpop.permute.xlu0 %280 }
 0x1aa   :  { %v283_v46 = vadd.f32 %v281_v44, %v273_v43 }
 0x1ac   :  { %1503 = vtanh.f32 %v283_v46 }
 0x1b2   :  { %v1504_v48 = vpop.eup %1503 }
 0x1b3   :  { %286 = vrot.lane.b32.xlu1 %v1504_v48, %s1812_s4  ;;  %v202_v48 = vadd.f32 %v2065_v19, %v2102_v55 }
 0x225   :  { %v287_v51 = vpop.permute.xlu1 %286 }
 0x226   :  { %v2099_v52 = vmul.f32 %v287_v51, %v270_v38 }
 0x228   :  { %306 = vmatmul.f32.vlgmr.msrb.gmra.mxu0 %v2099_v52 }
 0x2a5   :  { %v307_v61 = vpop.f32.mrf.mxu0 }
 0x2a6   :  { %v310_v62 = vadd.f32 %v307_v61, %v196_v60 }
 0x2a8   :  { %1505 = vtanh.f32 %v310_v62  ;;  %v1468_v4 = vmul.f32 -1.442695, %v310_v62 }
 0x2aa   :  { %1507 = vpow2.f32 %v1468_v4 }
 0x2ae   :  { %v1506_v63 = vpop.eup %1505 }
 0x2af   :  { %333 = vrot.lane.b32.xlu1 %v1506_v63, %s1812_s4 }
 0x2b0   :  { %v1508_v5 = vpop.eup %1507 }
 0x2b1   :  { %v314_v20 = vadd.f32 1.0, %v1508_v5 }
 0x2b3   :  { %1509 = vrcp.f32 %v314_v20  ;;  %v326_v26 = vand.u32 2147483648, %v314_v20  ;;  %vm320_vm7 = vweird.f32 %v314_v20  ;;  %v324_v27 = vand.u32 2147483647, %v314_v20 }
 0x2b5   :  { %v327_v29 = vor.u32 1.1754944e-38, %v326_v26  ;;  %vm325_vm9 = vcmp.eq.f32.partialorder %v324_v27, 8.507059e+37 }
 0x2b9   :  { %v1510_v21 = vpop.eup %1509 }
 0x2ba   :  { %v316_v22 = vmul.f32 %v1510_v21, %v314_v20  ;;  %vm321_vm6 = vweird.f32 %v1510_v21 }
 0x2bb   :  { %vm322_vm8 = vmor %vm320_vm7, %vm321_vm6 }
 0x2bc   :  { %v317_v23 = vsub.f32 1.0, %v316_v22 }
 0x2be   :  { %v318_v24 = vmul.f32 %v1510_v21, %v317_v23 }
 0x2c0   :  { %v319_v25 = vadd.f32 %v1510_v21, %v318_v24 }
 0x2c2   :  { %v323_v28 = vsel %vm322_vm8, %v1510_v21, %v319_v25 }
 0x2c3   :  { %v328_v31 = vsel %vm325_vm9, %v327_v29, %v323_v28 }
 0x2c4   :  { %v331_v33 = vmul.f32 %v328_v31, %v283_v46 }
 0x321   :  { %v334_v30 = vpop.permute.xlu1 %333 }
 0x322   :  { %v336_v32 = vmul.f32 %v334_v30, %v328_v31 }
 0x324   :  { %338 = vrot.lane.b32.xlu2 %v336_v32, %s1812_s4  ;;  %v205_v32 = vadd.f32 %v2065_v19, %v2104_v56 }
 0x37e   :  { %v339_v34 = vpop.permute.xlu2 %338 }
 0x37f   :  { %v341_v35 = vadd.f32 %v339_v34, %v331_v33 }
 0x381   :  { %1511 = vtanh.f32 %v341_v35 }
 0x387   :  { %v1512_v36 = vpop.eup %1511 }
 0x388   :  { %344 = vrot.lane.b32.xlu2 %v1512_v36, %s1812_s4 }
 0x3e2   :  { %v345_v37 = vpop.permute.xlu2 %344 }
 0x3e3   :  { %v2116_v38 = vmul.f32 %v345_v37, %v328_v31 }
 0x3e5   :  { %364 = vmatmul.f32.vlgmr.msrb.gmra.mxu1 %v2116_v38 }
 0x3e6   :  { %638 = vmatpush.msrb.mxu1 %v1910_v0  ;;  %v199_v0 = vadd.f32 %v2065_v19, %v198_v54 }
 0x3e8   :  { %639 = vmatpush.msrb.mxu1 %v1912_v1 }
 0x3ea   :  { %640 = vmatpush.msrb.mxu1 %v1916_v2 }
 0x3ec   :  { %641 = vmatpush.msrb.mxu1 %v1921_v3 }
 0x3ee   :  { %642 = vmatpush.msrb.mxu1 %v1931_v6 }
 0x3f0   :  { %643 = vmatpush.msrb.mxu1 %v1937_v7 }
 0x3f2   :  { %644 = vmatpush.msrb.mxu1 %v1943_v8 }
 0x3f4   :  { %645 = vmatpush.msrb.mxu1 %v1949_v9 }
 0x3f6   :  { %646 = vmatpush.msrb.mxu1 %v1955_v10 }
 0x3f8   :  { %647 = vmatpush.msrb.mxu1 %v1961_v11 }
 0x3fa   :  { %648 = vmatpush.msrb.mxu1 %v1967_v12 }
 0x3fc   :  { %649 = vmatpush.msrb.mxu1 %v1973_v13 }
 0x3fe   :  { %650 = vmatpush.msrb.mxu1 %v1979_v14 }
 0x400   :  { %651 = vmatpush.msrb.mxu1 %v1985_v15 }
 0x402   :  { %652 = vmatpush.msrb.mxu1 %v1991_v16 }
 0x404   :  { %653 = vmatpush.msrb.mxu1 %v1997_v17 }
 0x462   :  { %v365_v1 = vpop.f32.mrf.mxu1 }
 0x463   :  { %v368_v2 = vadd.f32 %v365_v1, %v199_v0 }
 0x465   :  { %1513 = vtanh.f32 %v368_v2  ;;  %v1469_v6 = vmul.f32 -1.442695, %v368_v2 }
 0x467   :  { %1515 = vpow2.f32 %v1469_v6 }
 0x46b   :  { %v1514_v3 = vpop.eup %1513 }
 0x46c   :  { %391 = vrot.lane.b32.xlu0 %v1514_v3, %s1812_s4 }
 0x46d   :  { %v1516_v7 = vpop.eup %1515 }
 0x46e   :  { %v372_v8 = vadd.f32 1.0, %v1516_v7 }
 0x470   :  { %1517 = vrcp.f32 %v372_v8  ;;  %v384_v14 = vand.u32 2147483648, %v372_v8  ;;  %vm378_vm11 = vweird.f32 %v372_v8  ;;  %v382_v15 = vand.u32 2147483647, %v372_v8 }
 0x472   :  { %v385_v17 = vor.u32 1.1754944e-38, %v384_v14  ;;  %vm383_vm13 = vcmp.eq.f32.partialorder %v382_v15, 8.507059e+37  ;;  %v711_v14 = vld [vmem:[#allocation5 + $0x78] sm:$0xff]  ;;  %v710_v15 = vld [vmem:[#allocation5 + $0x70] sm:$0xff] }
 0x473   :  { %769 = vmatpush.msrb.mxu3 %v711_v14 }
 0x475   :  { %770 = vmatpush.msrb.mxu3 %v710_v15 }
 0x476   :  { %v1518_v9 = vpop.eup %1517 }
 0x477   :  { %v374_v10 = vmul.f32 %v1518_v9, %v372_v8  ;;  %vm379_vm10 = vweird.f32 %v1518_v9 }
 0x478   :  { %vm380_vm12 = vmor %vm378_vm11, %vm379_vm10 }
 0x479   :  { %v375_v11 = vsub.f32 1.0, %v374_v10 }
 0x47b   :  { %v376_v12 = vmul.f32 %v1518_v9, %v375_v11 }
 0x47d   :  { %v377_v13 = vadd.f32 %v1518_v9, %v376_v12 }
 0x47f   :  { %v381_v16 = vsel %vm380_vm12, %v1518_v9, %v377_v13 }
 0x480   :  { %v386_v40 = vsel %vm383_vm13, %v385_v17, %v381_v16  ;;  %v709_v16 = vld [vmem:[#allocation5 + $0x68] sm:$0xff]  ;;  %v708_v17 = vld [vmem:[#allocation5 + $0x60] sm:$0xff] }
 0x481   :  { %v389_v42 = vmul.f32 %v386_v40, %v341_v35  ;;  %771 = vmatpush.msrb.mxu3 %v709_v16 }
 0x483   :  { %772 = vmatpush.msrb.mxu3 %v708_v17 }
 0x4de   :  { %v392_v39 = vpop.permute.xlu0 %391 }
 0x4df   :  { %v394_v41 = vmul.f32 %v392_v39, %v386_v40  ;;  %v707_v39 = vld [vmem:[#allocation5 + $0x58] sm:$0xff] }
 0x4e0   :  { %773 = vmatpush.msrb.mxu3 %v707_v39 }
 0x4e1   :  { %396 = vrot.lane.b32.xlu1 %v394_v41, %s1812_s4  ;;  %v705_v41 = vld [vmem:[#allocation5 + $0x48] sm:$0xff] }
 0x553   :  { %v397_v43 = vpop.permute.xlu1 %396 }
 0x554   :  { %v399_v44 = vadd.f32 %v397_v43, %v389_v42  ;;  %v704_v42 = vld [vmem:[#allocation5 + $0x40] sm:$0xff]  ;;  %v703_v43 = vld [vmem:[#allocation5 + $0x38] sm:$0xff] }
 0x556   :  { %1519 = vtanh.f32 %v399_v44 }
 0x55c   :  { %v1520_v45 = vpop.eup %1519 }
 0x55d   :  { %402 = vrot.lane.b32.xlu2 %v1520_v45, %s1812_s4  ;;  %v701_v45 = vld [vmem:[#allocation5 + $0x28] sm:$0xff] }
 0x5b7   :  { %v403_v46 = vpop.permute.xlu2 %402 }
 0x5b8   :  { %v2139_v47 = vmul.f32 %v403_v46, %v386_v40  ;;  %v706_v40 = vld [vmem:[#allocation5 + $0x50] sm:$0xff] }
 0x5b9   :  { %774 = vmatpush.msrb.mxu3 %v706_v40 }
 0x5ba   :  { %422 = vmatmul.f32.vlgmr.msra.gmra.mxu1 %v2139_v47 }
 0x5bb   :  { %775 = vmatpush.msrb.mxu3 %v705_v41 }
 0x5bd   :  { %776 = vmatpush.msrb.mxu3 %v704_v42 }
 0x5bf   :  { %777 = vmatpush.msrb.mxu3 %v703_v43 }
 0x637   :  { %v423_v49 = vpop.f32.mrf.mxu1 }
 0x638   :  { %v426_v50 = vadd.f32 %v423_v49, %v202_v48 }
 0x63a   :  { %1521 = vtanh.f32 %v426_v50  ;;  %v1470_v53 = vmul.f32 -1.442695, %v426_v50 }
 0x63c   :  { %1523 = vpow2.f32 %v1470_v53  ;;  %v699_v53 = vld [vmem:[#allocation5 + $0x18] sm:$0xff] }
 0x640   :  { %v1522_v51 = vpop.eup %1521 }
 0x641   :  { %449 = vrot.lane.b32.xlu0 %v1522_v51, %s1812_s4  ;;  %v700_v51 = vld [vmem:[#allocation5 + $0x20] sm:$0xff] }
 0x642   :  { %v1524_v54 = vpop.eup %1523 }
 0x643   :  { %v430_v60 = vadd.f32 1.0, %v1524_v54  ;;  %v698_v54 = vld [vmem:[#allocation5 + $0x10] sm:$0xff] }
 0x645   :  { %1525 = vrcp.f32 %v430_v60  ;;  %v442_v20 = vand.u32 2147483648, %v430_v60  ;;  %vm436_vm15 = vweird.f32 %v430_v60  ;;  %v440_v55 = vand.u32 2147483647, %v430_v60 }
 0x647   :  { %v443_v22 = vor.u32 1.1754944e-38, %v442_v20  ;;  %vm441_vm1 = vcmp.eq.f32.partialorder %v440_v55, 8.507059e+37 }
 0x64b   :  { %v1526_v61 = vpop.eup %1525 }
 0x64c   :  { %v432_v62 = vmul.f32 %v1526_v61, %v430_v60  ;;  %vm437_vm14 = vweird.f32 %v1526_v61  ;;  %v697_v60 = vld [vmem:[#allocation5 + $0x8] sm:$0xff] }
 0x64d   :  { %vm438_vm0 = vmor %vm436_vm15, %vm437_vm14 }
 0x64e   :  { %v433_v63 = vsub.f32 1.0, %v432_v62 }
 0x650   :  { %v434_v4 = vmul.f32 %v1526_v61, %v433_v63 }
 0x652   :  { %v435_v5 = vadd.f32 %v1526_v61, %v434_v4  ;;  %v208_v4 = vadd.f32 %v2065_v19, %v2106_v57 }
 0x654   :  { %v439_v21 = vsel %vm438_vm0, %v1526_v61, %v435_v5  ;;  %v696_v61 = vld [vmem:[#allocation5] sm:$0xff] }
 0x655   :  { %v444_v24 = vsel %vm441_vm1, %v443_v22, %v439_v21 }
 0x656   :  { %v447_v26 = vmul.f32 %v444_v24, %v399_v44  ;;  %v702_v44 = vld [vmem:[#allocation5 + $0x30] sm:$0xff] }
 0x657   :  { %778 = vmatpush.msrb.mxu3 %v702_v44 }
 0x659   :  { %779 = vmatpush.msrb.mxu3 %v701_v45 }
 0x65b   :  { %780 = vmatpush.msrb.mxu3 %v700_v51  ;;  %v214_v51 = vadd.f32 %v2065_v19, %v2110_v59 }
 0x65d   :  { %781 = vmatpush.msrb.mxu3 %v699_v53 }
 0x65f   :  { %782 = vmatpush.msrb.mxu3 %v698_v54 }
 0x661   :  { %783 = vmatpush.msrb.mxu3 %v697_v60 }
 0x663   :  { %784 = vmatpush.msrb.mxu3 %v696_v61 }
 0x6b3   :  { %v450_v23 = vpop.permute.xlu0 %449 }
 0x6b4   :  { %v452_v25 = vmul.f32 %v450_v23, %v444_v24 }
 0x6b6   :  { %454 = vrot.lane.b32.xlu1 %v452_v25, %s1812_s4 }
 0x728   :  { %v455_v27 = vpop.permute.xlu1 %454 }
 0x729   :  { %v457_v28 = vadd.f32 %v455_v27, %v447_v26 }
 0x72b   :  { %1527 = vtanh.f32 %v457_v28 }
 0x731   :  { %v1528_v29 = vpop.eup %1527 }
 0x732   :  { %460 = vrot.lane.b32.xlu2 %v1528_v29, %s1812_s4 }
 0x78c   :  { %v461_v30 = vpop.permute.xlu2 %460 }
 0x78d   :  { %v2147_v31 = vmul.f32 %v461_v30, %v444_v24 }
 0x78f   :  { %480 = vmatmul.f32.vlgmr.msra.gmra.mxu2 %v2147_v31 }
 0x812   :  { %v481_v33 = vpop.f32.mrf.mxu2 }
 0x813   :  { %v484_v34 = vadd.f32 %v481_v33, %v205_v32 }
 0x815   :  { %1529 = vtanh.f32 %v484_v34  ;;  %v1471_v36 = vmul.f32 -1.442695, %v484_v34 }
 0x817   :  { %1531 = vpow2.f32 %v1471_v36 }
 0x81b   :  { %v1530_v35 = vpop.eup %1529 }
 0x81c   :  { %507 = vrot.lane.b32.xlu0 %v1530_v35, %s1812_s4 }
 0x81d   :  { %v1532_v37 = vpop.eup %1531 }
 0x81e   :  { %v488_v0 = vadd.f32 1.0, %v1532_v37 }
 0x820   :  { %1533 = vrcp.f32 %v488_v0  ;;  %v500_v8 = vand.u32 2147483648, %v488_v0  ;;  %vm494_vm3 = vweird.f32 %v488_v0  ;;  %v498_v56 = vand.u32 2147483647, %v488_v0 }
 0x822   :  { %v501_v10 = vor.u32 1.1754944e-38, %v500_v8  ;;  %vm499_vm5 = vcmp.eq.f32.partialorder %v498_v56, 8.507059e+37 }
 0x826   :  { %v1534_v1 = vpop.eup %1533 }
 0x827   :  { %v490_v2 = vmul.f32 %v1534_v1, %v488_v0  ;;  %vm495_vm2 = vweird.f32 %v1534_v1 }
 0x828   :  { %vm496_vm4 = vmor %vm494_vm3, %vm495_vm2 }
 0x829   :  { %v491_v3 = vsub.f32 1.0, %v490_v2 }
 0x82b   :  { %v492_v6 = vmul.f32 %v1534_v1, %v491_v3 }
 0x82d   :  { %v493_v7 = vadd.f32 %v1534_v1, %v492_v6  ;;  %v211_v6 = vadd.f32 %v2065_v19, %v2108_v58 }
 0x82f   :  { %v497_v9 = vsel %vm496_vm4, %v1534_v1, %v493_v7 }
 0x830   :  { %v502_v12 = vsel %vm499_vm5, %v501_v10, %v497_v9 }
 0x831   :  { %v505_v46 = vmul.f32 %v502_v12, %v457_v28 }
 0x88e   :  { %v508_v11 = vpop.permute.xlu0 %507 }
 0x88f   :  { %v510_v13 = vmul.f32 %v508_v11, %v502_v12 }
 0x891   :  { %512 = vrot.lane.b32.xlu1 %v510_v13, %s1812_s4 }
 0x903   :  { %v513_v48 = vpop.permute.xlu1 %512 }
 0x904   :  { %v515_v49 = vadd.f32 %v513_v48, %v505_v46 }
 0x906   :  { %1535 = vtanh.f32 %v515_v49 }
 0x90c   :  { %v1536_v50 = vpop.eup %1535 }
 0x90d   :  { %518 = vrot.lane.b32.xlu2 %v1536_v50, %s1812_s4 }
 0x967   :  { %v519_v62 = vpop.permute.xlu2 %518 }
 0x968   :  { %v2155_v63 = vmul.f32 %v519_v62, %v502_v12 }
 0x96a   :  { %538 = vmatmul.f32.vlgmr.msra.gmra.mxu3 %v2155_v63 }
 0x972   :  { %785 = vmatmul.f32.vlgmr.msrb.gmra.mxu3 %v2099_v52 }
 0x97a   :  { %788 = vmatmul.f32.gmra.mxu3 %v2116_v38 }
 0x982   :  { %791 = vmatmul.f32.gmra.mxu3 %v2139_v47 }
 0x98a   :  { %794 = vmatmul.f32.gmra.mxu3 %v2147_v31 }
 0x992   :  { %797 = vmatmul.f32.gmra.mxu3 %v2155_v63 }
 0x9ed   :  { %v539_v5 = vpop.f32.mrf.mxu3 }
 0x9ee   :  { %v542_v20 = vadd.f32 %v539_v5, %v208_v4 }
 0x9f0   :  { %1537 = vtanh.f32 %v542_v20  ;;  %v1472_v21 = vmul.f32 -1.442695, %v542_v20 }
 0x9f2   :  { %1539 = vpow2.f32 %v1472_v21 }
 0x9f6   :  { %v1538_v55 = vpop.eup %1537 }
 0x9f7   :  { %565 = vrot.lane.b32.xlu0 %v1538_v55, %s1812_s4 }
 0x9f8   :  { %v1540_v22 = vpop.eup %1539 }
 0x9f9   :  { %v546_v23 = vadd.f32 1.0, %v1540_v22 }
 0x9fb   :  { %1541 = vrcp.f32 %v546_v23  ;;  %v558_v29 = vand.u32 2147483648, %v546_v23  ;;  %vm552_vm7 = vweird.f32 %v546_v23  ;;  %v556_v57 = vand.u32 2147483647, %v546_v23 }
 0x9fd   :  { %v559_v32 = vor.u32 1.1754944e-38, %v558_v29  ;;  %vm557_vm9 = vcmp.eq.f32.partialorder %v556_v57, 8.507059e+37  ;;  %v726_v29 = vld [vmem:[#allocation7 + $0x70] sm:$0xff]  ;;  %v725_v57 = vld [vmem:[#allocation7 + $0x68] sm:$0xff] }
 0xa01   :  { %v1542_v24 = vpop.eup %1541 }
 0xa02   :  { %v548_v25 = vmul.f32 %v1542_v24, %v546_v23  ;;  %vm553_vm6 = vweird.f32 %v1542_v24 }
 0xa03   :  { %vm554_vm8 = vmor %vm552_vm7, %vm553_vm6 }
 0xa04   :  { %v549_v26 = vsub.f32 1.0, %v548_v25 }
 0xa06   :  { %v550_v27 = vmul.f32 %v1542_v24, %v549_v26 }
 0xa08   :  { %v551_v28 = vadd.f32 %v1542_v24, %v550_v27 }
 0xa0a   :  { %v555_v30 = vsel %vm554_vm8, %v1542_v24, %v551_v28  ;;  %v727_v28 = vld [vmem:[#allocation7 + $0x78] sm:$0xff] }
 0xa0b   :  { %v560_v34 = vsel %vm557_vm9, %v559_v32, %v555_v30  ;;  %728 = vmatpush.msrb.mxu2 %v727_v28  ;;  %v2191_v30 = vld [vmem:[#allocation8 + $0x78] sm:$0xff]  ;;  %v2193_v32 = vld [vmem:[#allocation8 + $0x70] sm:$0xff] }
 0xa0c   :  { %v563_v36 = vmul.f32 %v560_v34, %v515_v49  ;;  %838 = vmatpush.msrb.mxu0 %v2191_v30  ;;  %896 = vmatpush.msra.mxu1 %v2191_v30 }
 0xa0d   :  { %729 = vmatpush.msrb.mxu2 %v726_v29  ;;  %1128 = vmatpush.msra.mxu3 %v2191_v30 }
 0xa0e   :  { %839 = vmatpush.msrb.mxu0 %v2193_v32  ;;  %897 = vmatpush.msra.mxu1 %v2193_v32 }
 0xa0f   :  { %730 = vmatpush.msrb.mxu2 %v725_v57  ;;  %1129 = vmatpush.msra.mxu3 %v2193_v32 }
 0xa69   :  { %v566_v33 = vpop.permute.xlu0 %565 }
 0xa6a   :  { %v568_v35 = vmul.f32 %v566_v33, %v560_v34  ;;  %v724_v33 = vld [vmem:[#allocation7 + $0x60] sm:$0xff] }
 0xa6b   :  { %731 = vmatpush.msrb.mxu2 %v724_v33 }
 0xa6c   :  { %570 = vrot.lane.b32.xlu1 %v568_v35, %s1812_s4  ;;  %v723_v35 = vld [vmem:[#allocation7 + $0x58] sm:$0xff] }
 0xa6d   :  { %732 = vmatpush.msrb.mxu2 %v723_v35 }
 0xade   :  { %v571_v37 = vpop.permute.xlu1 %570 }
 0xadf   :  { %v573_v0 = vadd.f32 %v571_v37, %v563_v36  ;;  %v2201_v36 = vld [vmem:[#allocation8 + $0x60] sm:$0xff]  ;;  %v722_v37 = vld [vmem:[#allocation7 + $0x50] sm:$0xff] }
 0xae0   :  { %733 = vmatpush.msrb.mxu2 %v722_v37 }
 0xae1   :  { %1543 = vtanh.f32 %v573_v0 }
 0xae7   :  { %v1544_v1 = vpop.eup %1543 }
 0xae8   :  { %576 = vrot.lane.b32.xlu2 %v1544_v1, %s1812_s4  ;;  %v721_v1 = vld [vmem:[#allocation7 + $0x48] sm:$0xff] }
 0xae9   :  { %734 = vmatpush.msrb.mxu2 %v721_v1 }
 0xb42   :  { %v577_v2 = vpop.permute.xlu2 %576 }
 0xb43   :  { %v2168_v3 = vmul.f32 %v577_v2, %v560_v34  ;;  %v2196_v34 = vld [vmem:[#allocation8 + $0x68] sm:$0xff]  ;;  %v2211_v2 = vld [vmem:[#allocation8 + $0x50] sm:$0xff] }
 0xb44   :  { %840 = vmatpush.msrb.mxu0 %v2196_v34  ;;  %898 = vmatpush.msra.mxu1 %v2196_v34 }
 0xb45   :  { %596 = vmatmul.f32.vlgmr.msra.gmra.mxu0 %v2168_v3  ;;  %800 = vmatmul.f32.gmra.mxu3 %v2168_v3 }
 0xb46   :  { %1130 = vmatpush.msra.mxu3 %v2196_v34  ;;  %841 = vmatpush.msrb.mxu0 %v2201_v36 }
 0xb47   :  { %899 = vmatpush.msra.mxu1 %v2201_v36 }
 0xb48   :  { %1131 = vmatpush.msra.mxu3 %v2201_v36 }
 0xbc2   :  { %v597_v7 = vpop.f32.mrf.mxu0 }
 0xbc3   :  { %v600_v8 = vadd.f32 %v597_v7, %v211_v6  ;;  %v720_v6 = vld [vmem:[#allocation7 + $0x40] sm:$0xff]  ;;  %v2216_v7 = vld [vmem:[#allocation8 + $0x48] sm:$0xff] }
 0xbc4   :  { %735 = vmatpush.msrb.mxu2 %v720_v6 }
 0xbc5   :  { %1545 = vtanh.f32 %v600_v8  ;;  %v1473_v9 = vmul.f32 -1.442695, %v600_v8  ;;  %v719_v8 = vld [vmem:[#allocation7 + $0x38] sm:$0xff] }
 0xbc6   :  { %736 = vmatpush.msrb.mxu2 %v719_v8 }
 0xbc7   :  { %1547 = vpow2.f32 %v1473_v9  ;;  %v718_v9 = vld [vmem:[#allocation7 + $0x30] sm:$0xff] }
 0xbc8   :  { %737 = vmatpush.msrb.mxu2 %v718_v9 }
 0xbcb   :  { %v1546_v56 = vpop.eup %1545 }
 0xbcc   :  { %623 = vrot.lane.b32.xlu0 %v1546_v56, %s1812_s4  ;;  %v2221_v56 = vld [vmem:[#allocation8 + $0x40] sm:$0xff] }
 0xbcd   :  { %v1548_v10 = vpop.eup %1547 }
 0xbce   :  { %v604_v11 = vadd.f32 1.0, %v1548_v10  ;;  %v2226_v10 = vld [vmem:[#allocation8 + $0x38] sm:$0xff] }
 0xbd0   :  { %1549 = vrcp.f32 %v604_v11  ;;  %v616_v17 = vand.u32 2147483648, %v604_v11  ;;  %vm610_vm11 = vweird.f32 %v604_v11  ;;  %v614_v58 = vand.u32 2147483647, %v604_v11 }
 0xbd2   :  { %v617_v40 = vor.u32 1.1754944e-38, %v616_v17  ;;  %vm615_vm13 = vcmp.eq.f32.partialorder %v614_v58, 8.507059e+37  ;;  %v714_v58 = vld [vmem:[#allocation7 + $0x10] sm:$0xff] }
 0xbd6   :  { %v1550_v12 = vpop.eup %1549 }
 0xbd7   :  { %v606_v13 = vmul.f32 %v1550_v12, %v604_v11  ;;  %vm611_vm10 = vweird.f32 %v1550_v12  ;;  %v717_v11 = vld [vmem:[#allocation7 + $0x28] sm:$0xff] }
 0xbd8   :  { %vm612_vm12 = vmor %vm610_vm11, %vm611_vm10  ;;  %738 = vmatpush.msrb.mxu2 %v717_v11 }
 0xbd9   :  { %v607_v14 = vsub.f32 1.0, %v606_v13  ;;  %v716_v13 = vld [vmem:[#allocation7 + $0x20] sm:$0xff] }
 0xbda   :  { %739 = vmatpush.msrb.mxu2 %v716_v13 }
 0xbdb   :  { %v608_v15 = vmul.f32 %v1550_v12, %v607_v14 }
 0xbdd   :  { %v609_v16 = vadd.f32 %v1550_v12, %v608_v15 }
 0xbdf   :  { %v613_v39 = vsel %vm612_vm12, %v1550_v12, %v609_v16  ;;  %v2231_v12 = vld [vmem:[#allocation8 + $0x30] sm:$0xff]  ;;  %v715_v16 = vld [vmem:[#allocation7 + $0x18] sm:$0xff] }
 0xbe0   :  { %v618_v42 = vsel %vm615_vm13, %v617_v40, %v613_v39  ;;  %740 = vmatpush.msrb.mxu2 %v715_v16  ;;  %v713_v39 = vld [vmem:[#allocation7 + $0x8] sm:$0xff] }
 0xbe1   :  { %v621_v44 = vmul.f32 %v618_v42, %v573_v0  ;;  %v2206_v0 = vld [vmem:[#allocation8 + $0x58] sm:$0xff] }
 0xbe2   :  { %842 = vmatpush.msrb.mxu0 %v2206_v0  ;;  %900 = vmatpush.msra.mxu1 %v2206_v0 }
 0xbe3   :  { %1132 = vmatpush.msra.mxu3 %v2206_v0  ;;  %741 = vmatpush.msrb.mxu2 %v714_v58 }
 0xbe4   :  { %843 = vmatpush.msrb.mxu0 %v2211_v2  ;;  %901 = vmatpush.msra.mxu1 %v2211_v2 }
 0xbe5   :  { %1133 = vmatpush.msra.mxu3 %v2211_v2  ;;  %742 = vmatpush.msrb.mxu2 %v713_v39 }
 0xbe6   :  { %844 = vmatpush.msrb.mxu0 %v2216_v7  ;;  %902 = vmatpush.msra.mxu1 %v2216_v7 }
 0xbe7   :  { %1134 = vmatpush.msra.mxu3 %v2216_v7 }
 0xbe8   :  { %845 = vmatpush.msrb.mxu0 %v2221_v56  ;;  %903 = vmatpush.msra.mxu1 %v2221_v56 }
 0xbe9   :  { %1135 = vmatpush.msra.mxu3 %v2221_v56 }
 0xbea   :  { %846 = vmatpush.msrb.mxu0 %v2226_v10  ;;  %904 = vmatpush.msra.mxu1 %v2226_v10 }
 0xbeb   :  { %1136 = vmatpush.msra.mxu3 %v2226_v10 }
 0xbec   :  { %847 = vmatpush.msrb.mxu0 %v2231_v12  ;;  %905 = vmatpush.msra.mxu1 %v2231_v12 }
 0xbed   :  { %1137 = vmatpush.msra.mxu3 %v2231_v12 }
 0xc3e   :  { %v624_v41 = vpop.permute.xlu0 %623 }
 0xc3f   :  { %v626_v43 = vmul.f32 %v624_v41, %v618_v42  ;;  %v712_v41 = vld [vmem:[#allocation7] sm:$0xff] }
 0xc40   :  { %743 = vmatpush.msrb.mxu2 %v712_v41 }
 0xc41   :  { %628 = vrot.lane.b32.xlu1 %v626_v43, %s1812_s4  ;;  %v2247_v43 = vld [vmem:[#allocation8 + $0x20] sm:$0xff] }
 0xc42   :  { %1070 = vmatpush.msra.mxu2 %v2191_v30 }
 0xc44   :  { %1071 = vmatpush.msra.mxu2 %v2193_v32 }
 0xc46   :  { %1072 = vmatpush.msra.mxu2 %v2196_v34 }
 0xc48   :  { %1073 = vmatpush.msra.mxu2 %v2201_v36 }
 0xc4a   :  { %1074 = vmatpush.msra.mxu2 %v2206_v0 }
 0xc4c   :  { %1075 = vmatpush.msra.mxu2 %v2211_v2 }
 0xc4e   :  { %1076 = vmatpush.msra.mxu2 %v2216_v7 }
 0xc50   :  { %1077 = vmatpush.msra.mxu2 %v2221_v56 }
 0xc52   :  { %1078 = vmatpush.msra.mxu2 %v2226_v10 }
 0xc54   :  { %1079 = vmatpush.msra.mxu2 %v2231_v12 }
 0xcb3   :  { %v629_v45 = vpop.permute.xlu1 %628 }
 0xcb4   :  { %v2176_v46 = vadd.f32 %v629_v45, %v621_v44  ;;  %v2249_v44 = vld [vmem:[#allocation8 + $0x18] sm:$0xff]  ;;  %v2255_v45 = vld [vmem:[#allocation8 + $0x10] sm:$0xff] }
 0xcb6   :  { %1551 = vtanh.f32 %v2176_v46 }
 0xcbc   :  { %v1552_v48 = vpop.eup %1551 }
 0xcbd   :  { %634 = vrot.lane.b32.xlu2 %v1552_v48, %s1812_s4  ;;  %v2271_v48 = vld [vmem:[#allocation8] sm:$0xff] }
 0xd17   :  { %v635_v49 = vpop.permute.xlu2 %634 }
 0xd18   :  { %v2180_v50 = vmul.f32 %v635_v49, %v618_v42  ;;  %v2244_v42 = vld [vmem:[#allocation8 + $0x28] sm:$0xff] }
 0xd19   :  { %848 = vmatpush.msrb.mxu0 %v2244_v42  ;;  %906 = vmatpush.msra.mxu1 %v2244_v42 }
 0xd1a   :  { %654 = vmatmul.f32.vlgmr.msrb.gmra.mxu1 %v2180_v50  ;;  %803 = vmatmul.f32.gmra.mxu3 %v2180_v50 }
 0xd1b   :  { %849 = vmatpush.msrb.mxu0 %v2247_v43  ;;  %1138 = vmatpush.msra.mxu3 %v2244_v42 }
 0xd1c   :  { %907 = vmatpush.msra.mxu1 %v2247_v43  ;;  %1080 = vmatpush.msra.mxu2 %v2244_v42 }
 0xd1d   :  { %850 = vmatpush.msrb.mxu0 %v2249_v44  ;;  %1139 = vmatpush.msra.mxu3 %v2247_v43 }
 0xd1e   :  { %908 = vmatpush.msra.mxu1 %v2249_v44  ;;  %1081 = vmatpush.msra.mxu2 %v2247_v43 }
 0xd1f   :  { %851 = vmatpush.msrb.mxu0 %v2255_v45  ;;  %1140 = vmatpush.msra.mxu3 %v2249_v44 }
 0xd20   :  { %909 = vmatpush.msra.mxu1 %v2255_v45  ;;  %1082 = vmatpush.msra.mxu2 %v2249_v44 }
 0xd21   :  { %1141 = vmatpush.msra.mxu3 %v2255_v45 }
 0xd22   :  { %1083 = vmatpush.msra.mxu2 %v2255_v45 }
 0xd97   :  { %v655_v53 = vpop.f32.mrf.mxu1 }
 0xd98   :  { %v658_v54 = vadd.f32 %v655_v53, %v214_v51 }
 0xd9a   :  { %1553 = vtanh.f32 %v658_v54  ;;  %v1474_v61 = vmul.f32 -1.442695, %v658_v54 }
 0xd9c   :  { %1555 = vpow2.f32 %v1474_v61 }
 0xda0   :  { %v1554_v60 = vpop.eup %1553 }
 0xda1   :  { %681 = vrot.lane.b32.xlu0 %v1554_v60, %s1812_s4 }
 0xda2   :  { %v1556_v62 = vpop.eup %1555 }
 0xda3   :  { %v662_v4 = vadd.f32 1.0, %v1556_v62 }
 0xda5   :  { %1557 = vrcp.f32 %v662_v4  ;;  %v674_v23 = vand.u32 2147483648, %v662_v4  ;;  %vm668_vm15 = vweird.f32 %v662_v4  ;;  %v672_v19 = vand.u32 2147483647, %v662_v4 }
 0xda7   :  { %v675_v24 = vor.u32 1.1754944e-38, %v674_v23  ;;  %vm673_vm1 = vcmp.eq.f32.partialorder %v672_v19, 8.507059e+37 }
 0xdab   :  { %v1558_v5 = vpop.eup %1557 }
 0xdac   :  { %v664_v20 = vmul.f32 %v1558_v5, %v662_v4  ;;  %vm669_vm14 = vweird.f32 %v1558_v5 }
 0xdad   :  { %vm670_vm0 = vmor %vm668_vm15, %vm669_vm14 }
 0xdae   :  { %v665_v55 = vsub.f32 1.0, %v664_v20 }
 0xdb0   :  { %v666_v21 = vmul.f32 %v1558_v5, %v665_v55 }
 0xdb2   :  { %v667_v22 = vadd.f32 %v1558_v5, %v666_v21 }
 0xdb4   :  { %v671_v59 = vsel %vm670_vm0, %v1558_v5, %v667_v22 }
 0xdb5   :  { %v2187_v26 = vsel %vm673_vm1, %v675_v24, %v671_v59 }
 0xdb6   :  { %v679_v14 = vmul.f32 %v2187_v26, %v2176_v46  ;;  %v2261_v46 = vld [vmem:[#allocation8 + $0x8] sm:$0xff] }
 0xdb7   :  { %852 = vmatpush.msrb.mxu0 %v2261_v46  ;;  %910 = vmatpush.msra.mxu1 %v2261_v46 }
 0xdb8   :  { %1142 = vmatpush.msra.mxu3 %v2261_v46  ;;  %1084 = vmatpush.msra.mxu2 %v2261_v46 }
 0xdb9   :  { %853 = vmatpush.msrb.mxu0 %v2271_v48  ;;  %911 = vmatpush.msra.mxu1 %v2271_v48 }
 0xdba   :  { %854 = vmatmul.f32.vlgmr.msrb.gmra.mxu0 %v1811_v18  ;;  %1143 = vmatpush.msra.mxu3 %v2271_v48 }
 0xdbb   :  { %954 = vmatpush.msra.mxu0 %v2191_v30  ;;  %1012 = vmatpush.msrb.mxu1 %v2191_v30 }
 0xdbc   :  { %1085 = vmatpush.msra.mxu2 %v2271_v48 }
 0xdbd   :  { %955 = vmatpush.msra.mxu0 %v2193_v32  ;;  %1013 = vmatpush.msrb.mxu1 %v2193_v32 }
 0xdbf   :  { %956 = vmatpush.msra.mxu0 %v2196_v34  ;;  %1014 = vmatpush.msrb.mxu1 %v2196_v34 }
 0xdc1   :  { %957 = vmatpush.msra.mxu0 %v2201_v36  ;;  %1015 = vmatpush.msrb.mxu1 %v2201_v36 }
 0xdc3   :  { %958 = vmatpush.msra.mxu0 %v2206_v0  ;;  %1016 = vmatpush.msrb.mxu1 %v2206_v0 }
 0xdc5   :  { %959 = vmatpush.msra.mxu0 %v2211_v2  ;;  %1017 = vmatpush.msrb.mxu1 %v2211_v2 }
 0xdc7   :  { %960 = vmatpush.msra.mxu0 %v2216_v7  ;;  %1018 = vmatpush.msrb.mxu1 %v2216_v7 }
 0xdc9   :  { %961 = vmatpush.msra.mxu0 %v2221_v56  ;;  %1019 = vmatpush.msrb.mxu1 %v2221_v56 }
 0xdcb   :  { %962 = vmatpush.msra.mxu0 %v2226_v10  ;;  %1020 = vmatpush.msrb.mxu1 %v2226_v10 }
 0xdcd   :  { %963 = vmatpush.msra.mxu0 %v2231_v12  ;;  %1021 = vmatpush.msrb.mxu1 %v2231_v12 }
 0xdcf   :  { %964 = vmatpush.msra.mxu0 %v2244_v42  ;;  %1022 = vmatpush.msrb.mxu1 %v2244_v42 }
 0xdd1   :  { %965 = vmatpush.msra.mxu0 %v2247_v43  ;;  %1023 = vmatpush.msrb.mxu1 %v2247_v43 }
 0xdd3   :  { %966 = vmatpush.msra.mxu0 %v2249_v44  ;;  %1024 = vmatpush.msrb.mxu1 %v2249_v44 }
 0xdd5   :  { %967 = vmatpush.msra.mxu0 %v2255_v45  ;;  %1025 = vmatpush.msrb.mxu1 %v2255_v45 }
 0xdd7   :  { %968 = vmatpush.msra.mxu0 %v2261_v46  ;;  %1026 = vmatpush.msrb.mxu1 %v2261_v46 }
 0xdd9   :  { %969 = vmatpush.msra.mxu0 %v2271_v48  ;;  %1027 = vmatpush.msrb.mxu1 %v2271_v48 }
 0xddb   :  { %1186 = vmatpush.msrb.mxu0 %v2191_v30 }
 0xddd   :  { %1187 = vmatpush.msrb.mxu0 %v2193_v32 }
 0xddf   :  { %1188 = vmatpush.msrb.mxu0 %v2196_v34 }
 0xde1   :  { %1189 = vmatpush.msrb.mxu0 %v2201_v36 }
 0xde3   :  { %1190 = vmatpush.msrb.mxu0 %v2206_v0 }
 0xde5   :  { %1191 = vmatpush.msrb.mxu0 %v2211_v2 }
 0xde7   :  { %1192 = vmatpush.msrb.mxu0 %v2216_v7 }
 0xde9   :  { %1193 = vmatpush.msrb.mxu0 %v2221_v56 }
 0xdeb   :  { %1194 = vmatpush.msrb.mxu0 %v2226_v10 }
 0xded   :  { %1195 = vmatpush.msrb.mxu0 %v2231_v12 }
 0xdef   :  { %1196 = vmatpush.msrb.mxu0 %v2244_v42 }
 0xdf1   :  { %1197 = vmatpush.msrb.mxu0 %v2247_v43 }
 0xdf3   :  { %1198 = vmatpush.msrb.mxu0 %v2249_v44 }
 0xdf5   :  { %1199 = vmatpush.msrb.mxu0 %v2255_v45 }
 0xdf7   :  { %1200 = vmatpush.msrb.mxu0 %v2261_v46 }
 0xdf9   :  { %1201 = vmatpush.msrb.mxu0 %v2271_v48 }
 0xe13   :  { %v682_v25 = vpop.permute.xlu0 %681 }
 0xe14   :  { %v684_v27 = vmul.f32 %v682_v25, %v2187_v26 }
 0xe16   :  { %686 = vrot.lane.b32.xlu1 %v684_v27, %s1812_s4 }
 0xe37   :  { %v855_v53 = vpop.f32.mrf.mxu0 }
 0xe88   :  { %v687_v15 = vpop.permute.xlu1 %686 }
 0xe89   :  { %v689_v17 = vadd.f32 %v687_v15, %v679_v14 }
 0xe8b   :  { %1559 = vtanh.f32 %v689_v17 }
 0xe91   :  { %v1560_v40 = vpop.eup %1559 }
 0xe92   :  { %692 = vrot.lane.b32.xlu2 %v1560_v40, %s1812_s4 }
 0xeec   :  { %v693_v18 = vpop.permute.xlu2 %692 }
 0xeed   :  { %v695_v49 = vmul.f32 %v693_v18, %v2187_v26 }
 0xeef   :  { %744 = vmatmul.f32.vlgmr.msrb.gmra.mxu2 %v695_v49  ;;  %806 = vmatmul.f32.gmra.mxu3 %v695_v49 }
 0xef7   :  { %747 = vmatmul.f32.gmra.mxu2 %v2180_v50 }
 0xeff   :  { %750 = vmatmul.f32.gmra.mxu2 %v2168_v3 }
 0xf07   :  { %753 = vmatmul.f32.gmra.mxu2 %v2155_v63  ;;  %v786_v63 = vpop.f32.mrf.mxu3 }
 0xf0f   :  { %756 = vmatmul.f32.gmra.mxu2 %v2147_v31  ;;  %v2350_v31 = vld [vmem:[%s2486_s6] ss:$0 sm:$0xff]  ;;  %v2352_v51 = vpop.f32.mrf.mxu3 }
 0xf17   :  { %759 = vmatmul.f32.gmra.mxu2 %v2139_v47 }
 0xf1f   :  { %762 = vmatmul.f32.gmra.mxu2 %v2116_v38  ;;  %v2357_v38 = vpop.f32.mrf.mxu3 }
 0xf27   :  { %765 = vmatmul.f32.gmra.mxu2 %v2099_v52  ;;  %v2362_v62 = vpop.f32.mrf.mxu3 }
 0xf2f   :  { %v2366_v5 = vpop.f32.mrf.mxu3 }
 0xf37   :  { %v801_v55 = vpop.f32.mrf.mxu3 }
 0xf3f   :  { %v804_v19 = vpop.f32.mrf.mxu3 }
 0xf72   :  { %v745_v3 = vpop.f32.mrf.mxu2 }
 0xf73   :  { %v787_v50 = vadd.f32 %v786_v63, %v745_v3 }
 0xf75   :  { %v814_v54 = vadd.f32 %v2350_v31, %v787_v50 }
 0xf77   :  { %v858_v47 = vadd.f32 %v855_v53, %v814_v54 }
 0xf79   :  { %1561 = vtanh.f32 %v858_v47  ;;  %v1475_v26 = vmul.f32 -1.442695, %v858_v47 }
 0xf7a   :  { %v2355_v60 = vpop.f32.mrf.mxu2 }
 0xf7b   :  { %1563 = vpow2.f32 %v1475_v26 }
 0xf7f   :  { %v1562_v52 = vpop.eup %1561 }
 0xf80   :  { %881 = vrot.lane.b32.xlu0 %v1562_v52, %s1812_s4 }
 0xf81   :  { %v1564_v27 = vpop.eup %1563 }
 0xf82   :  { %v2360_v61 = vpop.f32.mrf.mxu2  ;;  %v862_v28 = vadd.f32 1.0, %v1564_v27 }
 0xf84   :  { %1565 = vrcp.f32 %v862_v28  ;;  %v874_v1 = vand.u32 2147483648, %v862_v28  ;;  %vm868_vm3 = vweird.f32 %v862_v28  ;;  %v872_v6 = vand.u32 2147483647, %v862_v28 }
 0xf86   :  { %v875_v9 = vor.u32 1.1754944e-38, %v874_v1  ;;  %vm873_vm5 = vcmp.eq.f32.partialorder %v872_v6, 8.507059e+37 }
 0xf8a   :  { %v2364_v4 = vpop.f32.mrf.mxu2  ;;  %v1566_v29 = vpop.eup %1565 }
 0xf8b   :  { %v864_v57 = vmul.f32 %v1566_v29, %v862_v28  ;;  %vm869_vm2 = vweird.f32 %v1566_v29 }
 0xf8c   :  { %vm870_vm4 = vmor %vm868_vm3, %vm869_vm2 }
 0xf8d   :  { %v865_v33 = vsub.f32 1.0, %v864_v57 }
 0xf8f   :  { %v866_v35 = vmul.f32 %v1566_v29, %v865_v33 }
 0xf91   :  { %v867_v37 = vadd.f32 %v1566_v29, %v866_v35 }
 0xf92   :  { %v2368_v20 = vpop.f32.mrf.mxu2 }
 0xf93   :  { %v871_v8 = vsel %vm870_vm4, %v1566_v29, %v867_v37 }
 0xf94   :  { %v876_v13 = vsel %vm873_vm5, %v875_v9, %v871_v8 }
 0xf95   :  { %v879_v15 = vmul.f32 0.0, %v876_v13 }
 0xf9a   :  { %v760_v21 = vpop.f32.mrf.mxu2 }
 0xf9b   :  { %v802_v22 = vadd.f32 %v801_v55, %v760_v21 }
 0xf9d   :  { %v2371_v23 = vadd.f32 %v2350_v31, %v802_v22 }
 0xfa2   :  { %v763_v59 = vpop.f32.mrf.mxu2 }
 0xfa3   :  { %v805_v24 = vadd.f32 %v804_v19, %v763_v59 }
 0xfa5   :  { %v2374_v25 = vadd.f32 %v2350_v31, %v805_v24 }
 0xff2   :  { %v882_v11 = vpop.permute.xlu0 %881 }
 0xff3   :  { %v884_v14 = vmul.f32 %v882_v11, %v876_v13 }
 0xff5   :  { %886 = vrot.lane.b32.xlu1 %v884_v14, %s1812_s4 }
0x1067   :  { %v887_v16 = vpop.permute.xlu1 %886 }
0x1068   :  { %v889_v17 = vadd.f32 %v887_v16, %v879_v15  ;;  %v796_v16 = vadd.f32 %v2362_v62, %v2364_v4 }
0x106a   :  { %1567 = vtanh.f32 %v889_v17 }
0x1070   :  { %v1568_v58 = vpop.eup %1567 }
0x1071   :  { %892 = vrot.lane.b32.xlu2 %v1568_v58, %s1812_s4 }
0x10cb   :  { %v893_v39 = vpop.permute.xlu2 %892 }
0x10cc   :  { %v2378_v40 = vmul.f32 %v893_v39, %v876_v13 }
0x10ce   :  { %912 = vmatmul.f32.vlgmr.msra.gmra.mxu1 %v2378_v40 }
0x10cf   :  { %1244 = vmatpush.msra.mxu1 %v2191_v30  ;;  %v790_v30 = vadd.f32 %v2352_v51, %v2355_v60  ;;  %v793_v60 = vadd.f32 %v2357_v38, %v2360_v61 }
0x10d1   :  { %1245 = vmatpush.msra.mxu1 %v2193_v32  ;;  %v815_v32 = vadd.f32 %v2350_v31, %v790_v30  ;;  %v816_v52 = vadd.f32 %v2350_v31, %v793_v60 }
0x10d3   :  { %1246 = vmatpush.msra.mxu1 %v2196_v34 }
0x10d5   :  { %1247 = vmatpush.msra.mxu1 %v2201_v36 }
0x10d7   :  { %1248 = vmatpush.msra.mxu1 %v2206_v0 }
0x10d9   :  { %1249 = vmatpush.msra.mxu1 %v2211_v2 }
0x10db   :  { %1250 = vmatpush.msra.mxu1 %v2216_v7 }
0x10dd   :  { %1251 = vmatpush.msra.mxu1 %v2221_v56 }
0x10df   :  { %1252 = vmatpush.msra.mxu1 %v2226_v10 }
0x10e1   :  { %1253 = vmatpush.msra.mxu1 %v2231_v12 }
0x10e3   :  { %1254 = vmatpush.msra.mxu1 %v2244_v42 }
0x10e5   :  { %1255 = vmatpush.msra.mxu1 %v2247_v43 }
0x10e7   :  { %1256 = vmatpush.msra.mxu1 %v2249_v44 }
0x10e9   :  { %1257 = vmatpush.msra.mxu1 %v2255_v45 }
0x10eb   :  { %1258 = vmatpush.msra.mxu1 %v2261_v46 }
0x10ed   :  { %1259 = vmatpush.msra.mxu1 %v2271_v48 }
0x114b   :  { %v913_v34 = vpop.f32.mrf.mxu1 }
0x114c   :  { %v916_v36 = vadd.f32 %v913_v34, %v815_v32 }
0x114e   :  { %1569 = vtanh.f32 %v916_v36  ;;  %v1476_v2 = vmul.f32 -1.442695, %v916_v36 }
0x1150   :  { %1571 = vpow2.f32 %v1476_v2 }
0x1154   :  { %v1570_v0 = vpop.eup %1569 }
0x1155   :  { %939 = vrot.lane.b32.xlu0 %v1570_v0, %s1812_s4 }
0x1156   :  { %v1572_v7 = vpop.eup %1571 }
0x1157   :  { %v920_v56 = vadd.f32 1.0, %v1572_v7 }
0x1159   :  { %1573 = vrcp.f32 %v920_v56  ;;  %v932_v44 = vand.u32 2147483648, %v920_v56  ;;  %vm926_vm7 = vweird.f32 %v920_v56  ;;  %v930_v45 = vand.u32 2147483647, %v920_v56 }
0x115b   :  { %v933_v48 = vor.u32 1.1754944e-38, %v932_v44  ;;  %vm931_vm9 = vcmp.eq.f32.partialorder %v930_v45, 8.507059e+37 }
0x115f   :  { %v1574_v10 = vpop.eup %1573 }
0x1160   :  { %v922_v12 = vmul.f32 %v1574_v10, %v920_v56  ;;  %vm927_vm6 = vweird.f32 %v1574_v10 }
0x1161   :  { %vm928_vm8 = vmor %vm926_vm7, %vm927_vm6 }
0x1162   :  { %v923_v41 = vsub.f32 1.0, %v922_v12 }
0x1164   :  { %v924_v42 = vmul.f32 %v1574_v10, %v923_v41 }
0x1166   :  { %v925_v43 = vadd.f32 %v1574_v10, %v924_v42 }
0x1168   :  { %v929_v46 = vsel %vm928_vm8, %v1574_v10, %v925_v43 }
0x1169   :  { %v934_v49 = vsel %vm931_vm9, %v933_v48, %v929_v46 }
0x116a   :  { %v937_v3 = vmul.f32 %v934_v49, %v889_v17  ;;  %v817_v17 = vadd.f32 %v2350_v31, %v796_v16 }
0x11c7   :  { %v940_v18 = vpop.permute.xlu0 %939 }
0x11c8   :  { %v942_v63 = vmul.f32 %v940_v18, %v934_v49 }
0x11ca   :  { %944 = vrot.lane.b32.xlu1 %v942_v63, %s1812_s4 }
0x123c   :  { %v945_v50 = vpop.permute.xlu1 %944 }
0x123d   :  { %v947_v51 = vadd.f32 %v945_v50, %v937_v3  ;;  %v2424_v3 = vpop.f32.mrf.mxu2  ;;  %v799_v50 = vadd.f32 %v2366_v5, %v2368_v20 }
0x123f   :  { %1575 = vtanh.f32 %v947_v51 }
0x1245   :  { %v1576_v53 = vpop.eup %1575 }
0x1246   :  { %950 = vrot.lane.b32.xlu2 %v1576_v53, %s1812_s4 }
0x12a0   :  { %v951_v54 = vpop.permute.xlu2 %950 }
0x12a1   :  { %v2403_v47 = vmul.f32 %v951_v54, %v934_v49 }
0x12a3   :  { %970 = vmatmul.f32.vlgmr.msra.gmra.mxu0 %v2403_v47 }
0x1320   :  { %v971_v55 = vpop.f32.mrf.mxu0 }
0x1321   :  { %v974_v21 = vadd.f32 %v971_v55, %v816_v52 }
0x1323   :  { %1577 = vtanh.f32 %v974_v21  ;;  %v1477_v19 = vmul.f32 -1.442695, %v974_v21 }
0x1325   :  { %1579 = vpow2.f32 %v1477_v19 }
0x1329   :  { %v1578_v22 = vpop.eup %1577 }
0x132a   :  { %997 = vrot.lane.b32.xlu0 %v1578_v22, %s1812_s4 }
0x132b   :  { %v1580_v59 = vpop.eup %1579 }
0x132c   :  { %v978_v24 = vadd.f32 1.0, %v1580_v59 }
0x132e   :  { %1581 = vrcp.f32 %v978_v24  ;;  %v990_v38 = vand.u32 2147483648, %v978_v24  ;;  %vm984_vm11 = vweird.f32 %v978_v24  ;;  %v988_v61 = vand.u32 2147483647, %v978_v24 }
0x1330   :  { %v991_v35 = vor.u32 1.1754944e-38, %v990_v38  ;;  %vm989_vm13 = vcmp.eq.f32.partialorder %v988_v61, 8.507059e+37  ;;  %v1317_v61 = vld [vmem:[#allocation10 + $0x78] sm:$0xff] }
0x1331   :  { %1375 = vmatpush.msrb.mxu3 %v1317_v61 }
0x1334   :  { %v1582_v26 = vpop.eup %1581 }
0x1335   :  { %v980_v27 = vmul.f32 %v1582_v26, %v978_v24  ;;  %vm985_vm10 = vweird.f32 %v1582_v26 }
0x1336   :  { %vm986_vm12 = vmor %vm984_vm11, %vm985_vm10 }
0x1337   :  { %v981_v28 = vsub.f32 1.0, %v980_v27 }
0x1339   :  { %v982_v29 = vmul.f32 %v1582_v26, %v981_v28 }
0x133b   :  { %v983_v57 = vadd.f32 %v1582_v26, %v982_v29 }
0x133d   :  { %v987_v33 = vsel %vm986_vm12, %v1582_v26, %v983_v57 }
0x133e   :  { %v992_v1 = vsel %vm989_vm13, %v991_v35, %v987_v33  ;;  %v1316_v33 = vld [vmem:[#allocation10 + $0x70] sm:$0xff]  ;;  %v1315_v35 = vld [vmem:[#allocation10 + $0x68] sm:$0xff] }
0x133f   :  { %v995_v8 = vmul.f32 %v992_v1, %v947_v51  ;;  %v818_v51 = vadd.f32 %v2350_v31, %v799_v50  ;;  %1376 = vmatpush.msrb.mxu3 %v1316_v33 }
0x1341   :  { %1377 = vmatpush.msrb.mxu3 %v1315_v35 }
0x139c   :  { %v998_v37 = vpop.permute.xlu0 %997 }
0x139d   :  { %v1000_v6 = vmul.f32 %v998_v37, %v992_v1  ;;  %v1314_v37 = vld [vmem:[#allocation10 + $0x60] sm:$0xff] }
0x139e   :  { %1378 = vmatpush.msrb.mxu3 %v1314_v37 }
0x139f   :  { %1002 = vrot.lane.b32.xlu1 %v1000_v6, %s1812_s4  ;;  %v1312_v6 = vld [vmem:[#allocation10 + $0x50] sm:$0xff] }
0x1411   :  { %v1003_v9 = vpop.permute.xlu1 %1002 }
0x1412   :  { %v1005_v11 = vadd.f32 %v1003_v9, %v995_v8  ;;  %v1311_v8 = vld [vmem:[#allocation10 + $0x48] sm:$0xff]  ;;  %v1310_v9 = vld [vmem:[#allocation10 + $0x40] sm:$0xff] }
0x1414   :  { %1583 = vtanh.f32 %v1005_v11 }
0x141a   :  { %v1584_v13 = vpop.eup %1583 }
0x141b   :  { %1008 = vrot.lane.b32.xlu2 %v1584_v13, %s1812_s4  ;;  %v1308_v13 = vld [vmem:[#allocation10 + $0x30] sm:$0xff] }
0x1475   :  { %v1009_v14 = vpop.permute.xlu2 %1008 }
0x1476   :  { %v2412_v15 = vmul.f32 %v1009_v14, %v992_v1  ;;  %v1313_v1 = vld [vmem:[#allocation10 + $0x58] sm:$0xff]  ;;  %v1307_v14 = vld [vmem:[#allocation10 + $0x28] sm:$0xff] }
0x1477   :  { %1379 = vmatpush.msrb.mxu3 %v1313_v1 }
0x1478   :  { %1028 = vmatmul.f32.vlgmr.msrb.gmra.mxu1 %v2412_v15 }
0x1479   :  { %1380 = vmatpush.msrb.mxu3 %v1312_v6 }
0x147b   :  { %1381 = vmatpush.msrb.mxu3 %v1311_v8 }
0x147d   :  { %1382 = vmatpush.msrb.mxu3 %v1310_v9 }
0x14f5   :  { %v1029_v58 = vpop.f32.mrf.mxu1 }
0x14f6   :  { %v1032_v39 = vadd.f32 %v1029_v58, %v817_v17 }
0x14f8   :  { %1585 = vtanh.f32 %v1032_v39  ;;  %v1478_v32 = vmul.f32 -1.442695, %v1032_v39 }
0x14fa   :  { %1587 = vpow2.f32 %v1478_v32  ;;  %v1305_v32 = vld [vmem:[#allocation10 + $0x18] sm:$0xff] }
0x14fe   :  { %v1586_v30 = vpop.eup %1585 }
0x14ff   :  { %1055 = vrot.lane.b32.xlu0 %v1586_v30, %s1812_s4  ;;  %v1306_v30 = vld [vmem:[#allocation10 + $0x20] sm:$0xff] }
0x1500   :  { %v1588_v34 = vpop.eup %1587 }
0x1501   :  { %v1036_v36 = vadd.f32 1.0, %v1588_v34  ;;  %v1304_v34 = vld [vmem:[#allocation10 + $0x10] sm:$0xff] }
0x1503   :  { %1589 = vrcp.f32 %v1036_v36  ;;  %v1048_v62 = vand.u32 2147483648, %v1036_v36  ;;  %vm1042_vm15 = vweird.f32 %v1036_v36  ;;  %v1046_v4 = vand.u32 2147483647, %v1036_v36 }
0x1505   :  { %v1049_v41 = vor.u32 1.1754944e-38, %v1048_v62  ;;  %vm1047_vm1 = vcmp.eq.f32.partialorder %v1046_v4, 8.507059e+37 }
0x1509   :  { %v1590_v0 = vpop.eup %1589 }
0x150a   :  { %v1038_v2 = vmul.f32 %v1590_v0, %v1036_v36  ;;  %vm1043_vm14 = vweird.f32 %v1590_v0  ;;  %v1303_v36 = vld [vmem:[#allocation10 + $0x8] sm:$0xff] }
0x150b   :  { %vm1044_vm0 = vmor %vm1042_vm15, %vm1043_vm14 }
0x150c   :  { %v1039_v7 = vsub.f32 1.0, %v1038_v2 }
0x150e   :  { %v1040_v56 = vmul.f32 %v1590_v0, %v1039_v7 }
0x1510   :  { %v1041_v10 = vadd.f32 %v1590_v0, %v1040_v56  ;;  %v2440_v56 = vpop.f32.mrf.mxu3 }
0x1512   :  { %v1045_v12 = vsel %vm1044_vm0, %v1590_v0, %v1041_v10  ;;  %v1302_v0 = vld [vmem:[#allocation10] sm:$0xff] }
0x1513   :  { %v1050_v43 = vsel %vm1047_vm1, %v1049_v41, %v1045_v12 }
0x1514   :  { %v1053_v45 = vmul.f32 %v1050_v43, %v1005_v11  ;;  %v1309_v11 = vld [vmem:[#allocation10 + $0x38] sm:$0xff] }
0x1515   :  { %1383 = vmatpush.msrb.mxu3 %v1309_v11 }
0x1517   :  { %1384 = vmatpush.msrb.mxu3 %v1308_v13 }
0x1519   :  { %1385 = vmatpush.msrb.mxu3 %v1307_v14 }
0x151b   :  { %1386 = vmatpush.msrb.mxu3 %v1306_v30 }
0x151d   :  { %1387 = vmatpush.msrb.mxu3 %v1305_v32 }
0x151f   :  { %1388 = vmatpush.msrb.mxu3 %v1304_v34 }
0x1521   :  { %1389 = vmatpush.msrb.mxu3 %v1303_v36 }
0x1523   :  { %1390 = vmatpush.msrb.mxu3 %v1302_v0 }
0x1571   :  { %v1056_v42 = vpop.permute.xlu0 %1055 }
0x1572   :  { %v1058_v44 = vmul.f32 %v1056_v42, %v1050_v43 }
0x1574   :  { %1060 = vrot.lane.b32.xlu1 %v1058_v44, %s1812_s4 }
0x15e6   :  { %v1061_v46 = vpop.permute.xlu1 %1060 }
0x15e7   :  { %v1063_v48 = vadd.f32 %v1061_v46, %v1053_v45 }
0x15e9   :  { %1591 = vtanh.f32 %v1063_v48 }
0x15ef   :  { %v1592_v18 = vpop.eup %1591 }
0x15f0   :  { %1066 = vrot.lane.b32.xlu2 %v1592_v18, %s1812_s4 }
0x164a   :  { %v1067_v49 = vpop.permute.xlu2 %1066 }
0x164b   :  { %v2421_v63 = vmul.f32 %v1067_v49, %v1050_v43 }
0x164d   :  { %1086 = vmatmul.f32.vlgmr.msra.gmra.mxu2 %v2421_v63 }
0x16d0   :  { %v1087_v53 = vpop.f32.mrf.mxu2 }
0x16d1   :  { %v1090_v54 = vadd.f32 %v1087_v53, %v818_v51 }
0x16d3   :  { %1593 = vtanh.f32 %v1090_v54  ;;  %v1479_v52 = vmul.f32 -1.442695, %v1090_v54 }
0x16d5   :  { %1595 = vpow2.f32 %v1479_v52 }
0x16d9   :  { %v1594_v60 = vpop.eup %1593 }
0x16da   :  { %1113 = vrot.lane.b32.xlu0 %v1594_v60, %s1812_s4 }
0x16db   :  { %v1596_v55 = vpop.eup %1595 }
0x16dc   :  { %v1094_v21 = vadd.f32 1.0, %v1596_v55 }
0x16de   :  { %1597 = vrcp.f32 %v1094_v21  ;;  %v1106_v5 = vand.u32 2147483648, %v1094_v21  ;;  %vm1100_vm3 = vweird.f32 %v1094_v21  ;;  %v1104_v20 = vand.u32 2147483647, %v1094_v21 }
0x16e0   :  { %v1107_v28 = vor.u32 1.1754944e-38, %v1106_v5  ;;  %vm1105_vm5 = vcmp.eq.f32.partialorder %v1104_v20, 8.507059e+37 }
0x16e4   :  { %v1598_v22 = vpop.eup %1597 }
0x16e5   :  { %v1096_v19 = vmul.f32 %v1598_v22, %v1094_v21  ;;  %vm1101_vm2 = vweird.f32 %v1598_v22 }
0x16e6   :  { %vm1102_vm4 = vmor %vm1100_vm3, %vm1101_vm2 }
0x16e7   :  { %v1097_v59 = vsub.f32 1.0, %v1096_v19 }
0x16e9   :  { %v1098_v24 = vmul.f32 %v1598_v22, %v1097_v59 }
0x16eb   :  { %v1099_v26 = vadd.f32 %v1598_v22, %v1098_v24 }
0x16ed   :  { %v1103_v27 = vsel %vm1102_vm4, %v1598_v22, %v1099_v26 }
0x16ee   :  { %v1108_v57 = vsel %vm1105_vm5, %v1107_v28, %v1103_v27 }
0x16ef   :  { %v1111_v16 = vmul.f32 %v1108_v57, %v1063_v48 }
0x174c   :  { %v1114_v29 = vpop.permute.xlu0 %1113 }
0x174d   :  { %v1116_v38 = vmul.f32 %v1114_v29, %v1108_v57 }
0x174f   :  { %1118 = vrot.lane.b32.xlu1 %v1116_v38, %s1812_s4 }
0x17c1   :  { %v1119_v17 = vpop.permute.xlu1 %1118 }
0x17c2   :  { %v1121_v58 = vadd.f32 %v1119_v17, %v1111_v16 }
0x17c4   :  { %1599 = vtanh.f32 %v1121_v58 }
0x17ca   :  { %v1600_v39 = vpop.eup %1599 }
0x17cb   :  { %1124 = vrot.lane.b32.xlu2 %v1600_v39, %s1812_s4 }
0x1825   :  { %v1125_v2 = vpop.permute.xlu2 %1124 }
0x1826   :  { %v2432_v7 = vmul.f32 %v1125_v2, %v1108_v57 }
0x1828   :  { %1144 = vmatmul.f32.vlgmr.msra.gmra.mxu3 %v2432_v7 }
0x1830   :  { %1391 = vmatmul.f32.vlgmr.msrb.gmra.mxu3 %v2378_v40 }
0x1838   :  { %1394 = vmatmul.f32.gmra.mxu3 %v2403_v47 }
0x1840   :  { %1397 = vmatmul.f32.gmra.mxu3 %v2412_v15 }
0x1848   :  { %1400 = vmatmul.f32.gmra.mxu3 %v2421_v63 }
0x1850   :  { %1403 = vmatmul.f32.gmra.mxu3 %v2432_v7 }
0x18ab   :  { %v1145_v10 = vpop.f32.mrf.mxu3 }
0x18ac   :  { %v1148_v62 = vadd.f32 %v1145_v10, %v2371_v23 }
0x18ae   :  { %1601 = vtanh.f32 %v1148_v62  ;;  %v1480_v12 = vmul.f32 -1.442695, %v1148_v62 }
0x18b0   :  { %1603 = vpow2.f32 %v1480_v12 }
0x18b4   :  { %v1602_v4 = vpop.eup %1601 }
0x18b5   :  { %1171 = vrot.lane.b32.xlu0 %v1602_v4, %s1812_s4 }
0x18b6   :  { %v1604_v41 = vpop.eup %1603 }
0x18b7   :  { %v1152_v42 = vadd.f32 1.0, %v1604_v41 }
0x18b9   :  { %1605 = vrcp.f32 %v1152_v42  ;;  %v1164_v18 = vand.u32 2147483648, %v1152_v42  ;;  %vm1158_vm7 = vweird.f32 %v1152_v42  ;;  %v1162_v49 = vand.u32 2147483647, %v1152_v42 }
0x18bb   :  { %v1165_v50 = vor.u32 1.1754944e-38, %v1164_v18  ;;  %vm1163_vm9 = vcmp.eq.f32.partialorder %v1162_v49, 8.507059e+37  ;;  %v1331_v18 = vld [vmem:[#allocation11 + $0x68] sm:$0xff]  ;;  %v1330_v49 = vld [vmem:[#allocation11 + $0x60] sm:$0xff] }
0x18bf   :  { %v1606_v43 = vpop.eup %1605 }
0x18c0   :  { %v1154_v44 = vmul.f32 %v1606_v43, %v1152_v42  ;;  %vm1159_vm6 = vweird.f32 %v1606_v43 }
0x18c1   :  { %vm1160_vm8 = vmor %vm1158_vm7, %vm1159_vm6 }
0x18c2   :  { %v1155_v45 = vsub.f32 1.0, %v1154_v44 }
0x18c4   :  { %v1156_v46 = vmul.f32 %v1606_v43, %v1155_v45 }
0x18c6   :  { %v1157_v48 = vadd.f32 %v1606_v43, %v1156_v46  ;;  %v1333_v46 = vld [vmem:[#allocation11 + $0x78] sm:$0xff] }
0x18c7   :  { %1334 = vmatpush.msrb.mxu2 %v1333_v46 }
0x18c8   :  { %v1161_v23 = vsel %vm1160_vm8, %v1606_v43, %v1157_v48  ;;  %v1332_v48 = vld [vmem:[#allocation11 + $0x70] sm:$0xff] }
0x18c9   :  { %v1166_v53 = vsel %vm1163_vm9, %v1165_v50, %v1161_v23  ;;  %1335 = vmatpush.msrb.mxu2 %v1332_v48  ;;  %v1329_v23 = vld [vmem:[#allocation11 + $0x58] sm:$0xff]  ;;  %v1328_v50 = vld [vmem:[#allocation11 + $0x50] sm:$0xff] }
0x18ca   :  { %v1169_v60 = vmul.f32 %v1166_v53, %v1121_v58  ;;  %v808_v58 = vadd.f32 %v2440_v56, %v2424_v3 }
0x18cb   :  { %1336 = vmatpush.msrb.mxu2 %v1331_v18 }
0x18cc   :  { %v821_v39 = vadd.f32 %v2350_v31, %v808_v58 }
0x18cd   :  { %1337 = vmatpush.msrb.mxu2 %v1330_v49 }
0x18cf   :  { %1338 = vmatpush.msrb.mxu2 %v1329_v23 }
0x18d1   :  { %1339 = vmatpush.msrb.mxu2 %v1328_v50 }
0x1927   :  { %v1172_v51 = vpop.permute.xlu0 %1171 }
0x1928   :  { %v1174_v54 = vmul.f32 %v1172_v51, %v1166_v53  ;;  %v1327_v51 = vld [vmem:[#allocation11 + $0x48] sm:$0xff] }
0x1929   :  { %1340 = vmatpush.msrb.mxu2 %v1327_v51 }
0x192a   :  { %1176 = vrot.lane.b32.xlu1 %v1174_v54, %s1812_s4  ;;  %v1325_v54 = vld [vmem:[#allocation11 + $0x38] sm:$0xff] }
0x199c   :  { %v1177_v52 = vpop.permute.xlu1 %1176 }
0x199d   :  { %v1179_v55 = vadd.f32 %v1177_v52, %v1169_v60  ;;  %v1324_v60 = vld [vmem:[#allocation11 + $0x30] sm:$0xff]  ;;  %v1323_v52 = vld [vmem:[#allocation11 + $0x28] sm:$0xff] }
0x199f   :  { %1607 = vtanh.f32 %v1179_v55 }
0x19a5   :  { %v1608_v21 = vpop.eup %1607 }
0x19a6   :  { %1182 = vrot.lane.b32.xlu2 %v1608_v21, %s1812_s4 }
0x1a00   :  { %v1183_v22 = vpop.permute.xlu2 %1182 }
0x1a01   :  { %v2446_v19 = vmul.f32 %v1183_v22, %v1166_v53  ;;  %v1326_v53 = vld [vmem:[#allocation11 + $0x40] sm:$0xff] }
0x1a02   :  { %1341 = vmatpush.msrb.mxu2 %v1326_v53 }
0x1a03   :  { %1202 = vmatmul.f32.vlgmr.msrb.gmra.mxu0 %v2446_v19  ;;  %1406 = vmatmul.f32.gmra.mxu3 %v2446_v19 }
0x1a04   :  { %1342 = vmatpush.msrb.mxu2 %v1325_v54 }
0x1a06   :  { %1343 = vmatpush.msrb.mxu2 %v1324_v60 }
0x1a08   :  { %1344 = vmatpush.msrb.mxu2 %v1323_v52 }
0x1a80   :  { %v1203_v59 = vpop.f32.mrf.mxu0 }
0x1a81   :  { %v1206_v24 = vadd.f32 %v1203_v59, %v2374_v25  ;;  %v1321_v59 = vld [vmem:[#allocation11 + $0x18] sm:$0xff] }
0x1a83   :  { %1609 = vtanh.f32 %v1206_v24  ;;  %v1481_v5 = vmul.f32 -1.442695, %v1206_v24 }
0x1a85   :  { %1611 = vpow2.f32 %v1481_v5  ;;  %v1319_v5 = vld [vmem:[#allocation11 + $0x8] sm:$0xff] }
0x1a89   :  { %v1610_v26 = vpop.eup %1609 }
0x1a8a   :  { %1229 = vrot.lane.b32.xlu0 %v1610_v26, %s1812_s4  ;;  %v1320_v26 = vld [vmem:[#allocation11 + $0x10] sm:$0xff] }
0x1a8b   :  { %v1612_v20 = vpop.eup %1611 }
0x1a8c   :  { %v1210_v27 = vadd.f32 1.0, %v1612_v20 }
0x1a8e   :  { %1613 = vrcp.f32 %v1210_v27  ;;  %v1222_v33 = vand.u32 2147483648, %v1210_v27  ;;  %vm1216_vm11 = vweird.f32 %v1210_v27  ;;  %v1220_v35 = vand.u32 2147483647, %v1210_v27 }
0x1a90   :  { %v1223_v37 = vor.u32 1.1754944e-38, %v1222_v33  ;;  %vm1221_vm13 = vcmp.eq.f32.partialorder %v1220_v35, 8.507059e+37 }
0x1a94   :  { %v1614_v28 = vpop.eup %1613 }
0x1a95   :  { %v1212_v29 = vmul.f32 %v1614_v28, %v1210_v27  ;;  %vm1217_vm10 = vweird.f32 %v1614_v28  ;;  %v1318_v27 = vld [vmem:[#allocation11] sm:$0xff] }
0x1a96   :  { %vm1218_vm12 = vmor %vm1216_vm11, %vm1217_vm10 }
0x1a97   :  { %v1213_v57 = vsub.f32 1.0, %v1212_v29 }
0x1a99   :  { %v1214_v38 = vmul.f32 %v1614_v28, %v1213_v57  ;;  %v1392_v57 = vpop.f32.mrf.mxu3 }
0x1a9b   :  { %v1215_v61 = vadd.f32 %v1614_v28, %v1214_v38  ;;  %v1496_v38 = vld [vmem:[%s2490_s10] ss:$0 sm:$0xff]  ;;  %s1813_s10 = smov [#allocation13]  }
0x1a9c   :  { %s1440_s24 = sshll.u32 %s1813_s10, 4  ;;  %s1441_s24 = int_to_ptr.vmem [resolvable:$true] %s1440_s24 }
0x1a9d   :  { %v1219_v25 = vsel %vm1218_vm12, %v1614_v28, %v1215_v61 }
0x1a9e   :  { %v1224_v6 = vsel %vm1221_vm13, %v1223_v37, %v1219_v25 }
0x1a9f   :  { %v1227_v9 = vmul.f32 %v1224_v6, %v1179_v55  ;;  %v1322_v55 = vld [vmem:[#allocation11 + $0x20] sm:$0xff] }
0x1aa0   :  { %1345 = vmatpush.msrb.mxu2 %v1322_v55 }
0x1aa1   :  { %v1395_v35 = vpop.f32.mrf.mxu3 }
0x1aa2   :  { %1346 = vmatpush.msrb.mxu2 %v1321_v59 }
0x1aa4   :  { %1347 = vmatpush.msrb.mxu2 %v1320_v26 }
0x1aa6   :  { %1348 = vmatpush.msrb.mxu2 %v1319_v5 }
0x1aa8   :  { %1349 = vmatpush.msrb.mxu2 %v1318_v27 }
0x1afc   :  { %v1230_v1 = vpop.permute.xlu0 %1229 }
0x1afd   :  { %v1232_v8 = vmul.f32 %v1230_v1, %v1224_v6 }
0x1aff   :  { %1234 = vrot.lane.b32.xlu1 %v1232_v8, %s1812_s4 }
0x1b71   :  { %v1235_v11 = vpop.permute.xlu1 %1234 }
0x1b72   :  { %v1237_v13 = vadd.f32 %v1235_v11, %v1227_v9 }
0x1b74   :  { %1615 = vtanh.f32 %v1237_v13 }
0x1b7a   :  { %v1616_v14 = vpop.eup %1615 }
0x1b7b   :  { %1240 = vrot.lane.b32.xlu2 %v1616_v14, %s1812_s4 }
0x1bd5   :  { %v1241_v16 = vpop.permute.xlu2 %1240 }
0x1bd6   :  { %v2454_v17 = vmul.f32 %v1241_v16, %v1224_v6 }
0x1bd8   :  { %1260 = vmatmul.f32.vlgmr.msra.gmra.mxu1 %v2454_v17  ;;  %1409 = vmatmul.f32.gmra.mxu3 %v2454_v17 }
0x1c55   :  { %v1261_v30 = vpop.f32.mrf.mxu1 }
0x1c56   :  { %v1264_v32 = vadd.f32 %v1261_v30, %v821_v39 }
0x1c58   :  { %1617 = vtanh.f32 %v1264_v32  ;;  %v1482_v36 = vmul.f32 -1.442695, %v1264_v32 }
0x1c5a   :  { %1619 = vpow2.f32 %v1482_v36 }
0x1c5e   :  { %v1618_v34 = vpop.eup %1617 }
0x1c5f   :  { %1287 = vrot.lane.b32.xlu0 %v1618_v34, %s1812_s4 }
0x1c60   :  { %v1620_v0 = vpop.eup %1619 }
0x1c61   :  { %v1268_v2 = vadd.f32 1.0, %v1620_v0 }
0x1c63   :  { %1621 = vrcp.f32 %v1268_v2  ;;  %v1280_v3 = vand.u32 2147483648, %v1268_v2  ;;  %vm1274_vm15 = vweird.f32 %v1268_v2  ;;  %v1278_v31 = vand.u32 2147483647, %v1268_v2 }
0x1c65   :  { %v1281_v42 = vor.u32 1.1754944e-38, %v1280_v3  ;;  %vm1279_vm1 = vcmp.eq.f32.partialorder %v1278_v31, 8.507059e+37 }
0x1c69   :  { %v1622_v10 = vpop.eup %1621 }
0x1c6a   :  { %v1270_v62 = vmul.f32 %v1622_v10, %v1268_v2  ;;  %vm1275_vm14 = vweird.f32 %v1622_v10 }
0x1c6b   :  { %vm1276_vm0 = vmor %vm1274_vm15, %vm1275_vm14 }
0x1c6c   :  { %v1271_v4 = vsub.f32 1.0, %v1270_v62 }
0x1c6e   :  { %v1272_v12 = vmul.f32 %v1622_v10, %v1271_v4 }
0x1c70   :  { %v1273_v41 = vadd.f32 %v1622_v10, %v1272_v12 }
0x1c72   :  { %v1277_v56 = vsel %vm1276_vm0, %v1622_v10, %v1273_v41 }
0x1c73   :  { %v1282_v44 = vsel %vm1279_vm1, %v1281_v42, %v1277_v56 }
0x1c74   :  { %v1285_v21 = vmul.f32 %v1282_v44, %v1237_v13 }
0x1cd1   :  { %v1288_v43 = vpop.permute.xlu0 %1287 }
0x1cd2   :  { %v1290_v45 = vmul.f32 %v1288_v43, %v1282_v44 }
0x1cd4   :  { %1292 = vrot.lane.b32.xlu1 %v1290_v45, %s1812_s4 }
0x1d46   :  { %v1293_v22 = vpop.permute.xlu1 %1292 }
0x1d47   :  { %v1295_v24 = vadd.f32 %v1293_v22, %v1285_v21 }
0x1d49   :  { %1623 = vtanh.f32 %v1295_v24 }
0x1d4f   :  { %v1624_v20 = vpop.eup %1623 }
0x1d50   :  { %1298 = vrot.lane.b32.xlu2 %v1624_v20, %s1812_s4 }
0x1daa   :  { %v1299_v28 = vpop.permute.xlu2 %1298 }
0x1dab   :  { %v1301_v29 = vmul.f32 %v1299_v28, %v1282_v44 }
0x1dad   :  { %1350 = vmatmul.f32.vlgmr.msrb.gmra.mxu2 %v1301_v29  ;;  %1412 = vmatmul.f32.gmra.mxu3 %v1301_v29 }
0x1db5   :  { %1353 = vmatmul.f32.gmra.mxu2 %v2454_v17 }
0x1dbd   :  { %1356 = vmatmul.f32.gmra.mxu2 %v2446_v19 }
0x1dc5   :  { %1359 = vmatmul.f32.gmra.mxu2 %v2432_v7 }
0x1dcd   :  { %1362 = vmatmul.f32.gmra.mxu2 %v2421_v63  ;;  %v1398_v63 = vpop.f32.mrf.mxu3 }
0x1dd5   :  { %1365 = vmatmul.f32.gmra.mxu2 %v2412_v15 }
0x1ddd   :  { %1368 = vmatmul.f32.gmra.mxu2 %v2403_v47 }
0x1de5   :  { %1371 = vmatmul.f32.gmra.mxu2 %v2378_v40  ;;  %v1401_v40 = vpop.f32.mrf.mxu3 }
0x1ded   :  { %v1404_v11 = vpop.f32.mrf.mxu3 }
0x1df5   :  { %v1407_v17 = vpop.f32.mrf.mxu3 }
0x1dfd   :  { %v1410_v32 = vpop.f32.mrf.mxu3 }
0x1e30   :  { %v1351_v61 = vpop.f32.mrf.mxu2  ;;  %v1413_v2 = vpop.f32.mrf.mxu3 }
0x1e31   :  { %v1393_v33 = vadd.f32 %v1392_v57, %v1351_v61 }
0x1e33   :  { %v1420_v25 = vadd.f32 %v1496_v38, %v1393_v33 }
0x1e35   :  { %1428 = vst [vmem:[#allocation13] sm:$0xff] %v1420_v25 }
0x1e38   :  { %v1354_v19 = vpop.f32.mrf.mxu2 }
0x1e39   :  { %v1396_v7 = vadd.f32 %v1395_v35, %v1354_v19 }
0x1e3b   :  { %v1421_v37 = vadd.f32 %v1496_v38, %v1396_v7 }
0x1e3d   :  { %1429 = vst [vmem:[#allocation13 + $0x8] sm:$0xff] %v1421_v37 }
0x1e40   :  { %v1357_v15 = vpop.f32.mrf.mxu2 }
0x1e41   :  { %v1399_v1 = vadd.f32 %v1398_v63, %v1357_v15 }
0x1e43   :  { %v1422_v47 = vadd.f32 %v1496_v38, %v1399_v1 }
0x1e45   :  { %1430 = vst [vmem:[#allocation13 + $0x10] sm:$0xff] %v1422_v47 }
0x1e48   :  { %v1360_v6 = vpop.f32.mrf.mxu2 }
0x1e49   :  { %v1402_v8 = vadd.f32 %v1401_v40, %v1360_v6 }
0x1e4b   :  { %v1423_v9 = vadd.f32 %v1496_v38, %v1402_v8 }
0x1e4d   :  { %1431 = vst [vmem:[#allocation13 + $0x18] sm:$0xff] %v1423_v9 }
0x1e50   :  { %v1363_v13 = vpop.f32.mrf.mxu2 }
0x1e51   :  { %v1405_v14 = vadd.f32 %v1404_v11, %v1363_v13 }
0x1e53   :  { %v1424_v16 = vadd.f32 %v1496_v38, %v1405_v14 }
0x1e55   :  { %1432 = vst [vmem:[#allocation13 + $0x20] sm:$0xff] %v1424_v16 }
0x1e58   :  { %v1366_v58 = vpop.f32.mrf.mxu2 }
0x1e59   :  { %v1408_v39 = vadd.f32 %v1407_v17, %v1366_v58 }
0x1e5b   :  { %v1425_v30 = vadd.f32 %v1496_v38, %v1408_v39 }
0x1e5d   :  { %1433 = vst [vmem:[#allocation13 + $0x28] sm:$0xff] %v1425_v30 }
0x1e60   :  { %v1369_v34 = vpop.f32.mrf.mxu2 }
0x1e61   :  { %v1411_v36 = vadd.f32 %v1410_v32, %v1369_v34 }
0x1e63   :  { %v1426_v0 = vadd.f32 %v1496_v38, %v1411_v36 }
0x1e65   :  { %1434 = vst [vmem:[#allocation13 + $0x30] sm:$0xff] %v1426_v0 }
0x1e68   :  { %v1372_v10 = vpop.f32.mrf.mxu2 }
0x1e69   :  { %v1414_v62 = vadd.f32 %v1413_v2, %v1372_v10 }
0x1e6b   :  { %v1427_v4 = vadd.f32 %v1496_v38, %v1414_v62 }
0x1e6d   :  { %1435 = vst [vmem:[#allocation13 + $0x38] sm:$0xff] %v1427_v4 }
0x1e6e   :  { %1448 = dma.vmem_to_hbm [thread:$0]  %s1441_s24, 1024, %s1443_s27, [#allocation4], %s1804_s25, %s1804_s25, %s1805_s26  }
0x1e6f   :  { %1801 = dma.done.wait [#allocation4], 1024  }
0x1e70   :  { %1802 = vsyncadd [#allocation4], 4294966272 }
0x1e71   :  { %1453 = vsyncpa [#allocation3], 1 }
0x1e72   :  { %1454 = vsyncpa [#allocation6], 1 }
0x1e73   :  { %1455 = vsyncpa [#allocation9], 1 }
0x1e74   :  { %1456 = vsyncpa [#allocation12], 1 }
0x1e75   :  { %1457 = vsyncpa [#allocation4], 1 }

</bundles_post_ra>
